<compile_context>
chip_gen: v5e
topology: v5e:2x2
jax: 0.10.0
libtpu: 0.0.40
codegen_flags: <defaults>
</compile_context>

<pallas_src>
import numpy as np
import jax
import jax.numpy as jnp
from jax import lax
from jax.experimental import pallas as pl
from jax.experimental.pallas import tpu as pltpu


def _round_up(a, b):
    return (a + b - 1) // b * b


# --------------------------------------------------------------------------
# Fixed Malvar filter banks (deterministic "parameters" from module __init__)
# --------------------------------------------------------------------------
def _base_kernels():
    g_at_r = np.array([[0, 0, -1, 0, 0],
                       [0, 0, 2, 0, 0],
                       [-1, 2, 4, 2, -1],
                       [0, 0, 2, 0, 0],
                       [0, 0, -1, 0, 0]], np.float32) / 8.0
    r_at_g1 = np.array([[0, 0, 0.5, 0, 0],
                        [0, -1, 0, -1, 0],
                        [-1, 4, 5, 4, -1],
                        [0, -1, 0, -1, 0],
                        [0, 0, 0.5, 0, 0]], np.float32) / 8.0
    r_at_g2 = np.array([[0, 0, -1, 0, 0],
                        [0, -1, 4, -1, 0],
                        [0.5, 0, 5, 0, 0.5],
                        [0, -1, 4, -1, 0],
                        [0, 0, -1, 0, 0]], np.float32) / 8.0
    r_at_b = np.array([[0, 0, -1.5, 0, 0],
                       [0, 2, 0, 2, 0],
                       [-1.5, 0, 6, 0, -1.5],
                       [0, 2, 0, 2, 0],
                       [0, 0, -1.5, 0, 0]], np.float32) / 8.0
    return dict(g_at_r=g_at_r, g_at_b=g_at_r.copy(),
                r_at_g1=r_at_g1, r_at_g2=r_at_g2, r_at_b=r_at_b,
                b_at_g1=r_at_g2.copy(), b_at_g2=r_at_g1.copy(),
                b_at_r=r_at_b.copy())


def _parity_taps():
    """W[plane, row_parity, col_parity, 5, 5] full-res taps; plane = (B, G, R).

    full[c, 2i+p, 2j+q] = sum_{dh,dw} W[c,p,q,dh,dw] * X[2i+p+dh-2, 2j+q+dw-2]
    where X is the pixel-shuffled full-res mosaic.
    """
    K = _base_kernels()

    def delta(dh, dw):
        k = np.zeros((5, 5), np.float32)
        k[2 + dh, 2 + dw] = 1.0
        return k

    fh = lambda k: np.ascontiguousarray(k[:, ::-1])    # torch flip dims=(3,)
    fv = lambda k: np.ascontiguousarray(k[::-1, :])    # torch flip dims=(2,)
    fhv = lambda k: np.ascontiguousarray(k[::-1, ::-1])

    W = np.zeros((3, 2, 2, 5, 5), np.float32)
    # ---- B plane ----
    W[0, 0, 0] = K['b_at_r']          # b00: conv(x, b_at_r)          @ (even, even)
    W[0, 0, 1] = fh(K['b_at_g1'])     # b01: conv(x.flip(3), .).flip(3)
    W[0, 1, 0] = fv(K['b_at_g2'])     # b10: conv(x.flip(2), .).flip(2)
    W[0, 1, 1] = delta(0, -1)         # b11: x[:, :, 1::2, 0::2]
    # ---- G plane ----
    W[1, 0, 0] = K['g_at_r']          # g00
    W[1, 0, 1] = delta(0, -1)         # g01: x[:, :, 0::2, 0::2]
    W[1, 1, 0] = delta(0, 1)          # g10: x[:, :, 1::2, 1::2]
    W[1, 1, 1] = fhv(K['g_at_b'])     # g11: conv(x.flip(2,3), .).flip(2,3)
    # ---- R plane ----
    W[2, 0, 0] = delta(0, 1)          # r00: x[:, :, 0::2, 1::2]
    W[2, 0, 1] = fh(K['r_at_g1'])     # r01
    W[2, 1, 0] = fv(K['r_at_g2'])     # r10
    W[2, 1, 1] = fhv(K['r_at_b'])     # r11
    return W


def _quarter_tap_groups():
    """Quarter-res taps, grouped by scalar weight.

    Returns a list over the 12 outputs:
      ((c, p, q), [(weight, [(ch, di, dj), ...]), ...])
    where out[c,p,q][i, j] = sum_g w_g * sum_{(ch,di,dj) in g} x_pad[ch, i+di, j+dj]
    and x_pad is the input padded by 1 quarter-res row/col on every side
    (ch = 2*row_parity + col_parity of the Bayer mosaic; di, dj in {0,1,2}).
    """
    Wf = _parity_taps()
    table = []
    for c in range(3):
        for p in range(2):
            for q in range(2):
                groups = {}
                for dh in range(5):
                    for dw in range(5):
                        w = float(Wf[c, p, q, dh, dw])
                        if w == 0.0:
                            continue
                        rp = (p + dh) % 2
                        cp = (q + dw) % 2
                        di = 1 + (p + dh - 2) // 2   # in {0, 1, 2}
                        dj = 1 + (q + dw - 2) // 2   # in {0, 1, 2}
                        groups.setdefault(w, []).append((2 * rp + cp, di, dj))
                table.append(((c, p, q), sorted(groups.items())))
    return table


# --------------------------------------------------------------------------
# Pallas kernel
# --------------------------------------------------------------------------
def _make_kernel(TH, W, Wp, tap_table):
    R = TH - 8  # rows computed directly from the bulk block

    def accumulate(win, groups):
        acc = None
        for w, taps in groups:
            s = None
            for (ch, di, dj) in taps:
                v = win(ch, di, dj)
                s = v if s is None else s + v
            term = s if w == 1.0 else s * w     # scalar compile-time weight
            acc = term if acc is None else acc + term
        return acc

    def kernel(bulk_ref, halo_ref, out_ref, sbuf):
        # bulk_ref: (1, 4, TH, Wp)  padded quarter rows [t*TH, t*TH + TH)
        # halo_ref: (1, 4, 8,  Wp)  padded quarter rows [(t+1)*TH, (t+1)*TH + 8)
        # out_ref : (1, 12, TH, W)  12 quarter-res planes (c*4 + p*2 + q)
        # sbuf    : (4, 16, Wp)     last 8 bulk rows + 8 halo rows (tiny stitch)
        sbuf[:, 0:8, :] = bulk_ref[0, :, TH - 8:TH, :]
        sbuf[:, 8:16, :] = halo_ref[0]

        if R > 0:
            # Main pass: output rows [0, TH-8) only need bulk rows [0, TH-6).
            def win_main(ch, di, dj):
                return bulk_ref[0, ch, di:di + R, dj:dj + W]

            for (c, p, q), groups in tap_table:
                out_ref[0, 4 * c + 2 * p + q, 0:R, :] = accumulate(win_main, groups)

        # Tail pass: last 8 output rows need the 2-row bottom halo.
        def win_tail(ch, di, dj):
            return sbuf[ch, di:di + 8, dj:dj + W]

        for (c, p, q), groups in tap_table:
            out_ref[0, 4 * c + 2 * p + q, R:TH, :] = accumulate(win_tail, groups)

    return kernel


# --------------------------------------------------------------------------
# Wrapper
# --------------------------------------------------------------------------
def demosaic_malvar_pallas(x, *, tile_rows=None, vmem_budget_bytes=None):
    """x: (N, 4, H, W) float32 Bayer planes -> (N, 3, 2H, 2W) float32 [B, G, R]."""
    N, C, H, W = x.shape
    assert C == 4, "expected (N, 4, H, W) Bayer planes"
    x = x.astype(jnp.float32)
    Wp = W + 2  # +1 column halo on each side

    # Per-chip VMEM capacity (trace-time query); fall back to the v7x 64 MiB.
    try:
        vmem_cap = int(pltpu.get_tpu_info().vmem_capacity_bytes)
    except Exception:
        vmem_cap = 64 * 1024 * 1024
    if vmem_budget_bytes is None:
        vmem_budget_bytes = min(int(vmem_cap * 0.45), 96 * 1024 * 1024)

    # Resident VMEM per quarter-res tile row (bytes):
    #   double-buffered bulk input (4 planes, Wp wide)
    # + double-buffered output (12 planes, W wide)
    # + ~6 rows of live accumulator / window temporaries.
    per_row = 4 * (2 * 4 * Wp + 2 * 12 * W + 6 * W)

    if tile_rows is not None:
        TH = _round_up(max(8, int(tile_rows)), 8)
        T = pl.cdiv(H, TH)
    else:
        t_max = max(8, (vmem_budget_bytes // per_row) // 8 * 8)
        T = max(1, pl.cdiv(H, t_max))
        # v7x has 2 TensorCores: give a single-image call >= 2 parallel steps.
        if N * T < 2 and H > 8:
            T = 2
        TH = _round_up(pl.cdiv(H, T), 8)
        T = pl.cdiv(H, TH)

    Hq = T * TH          # padded quarter-res output rows (cropped afterwards)
    Hp = Hq + 8          # padded input rows: +1 top halo row, bottom = 8-row halo only
    x_pad = jnp.pad(x, ((0, 0), (0, 0), (1, Hp - H - 1), (1, Wp - W - 1)))

    kernel = _make_kernel(TH, W, Wp, _quarter_tap_groups())
    vmem_limit = int(min(vmem_cap * 3 // 4,
                         max(32 * 1024 * 1024, per_row * TH + 16 * 1024 * 1024)))

    out_q = pl.pallas_call(
        kernel,
        out_shape=jax.ShapeDtypeStruct((N, 12, Hq, W), jnp.float32),
        grid=(N, T),
        in_specs=[
            # bulk rows of this tile (auto double-buffered)
            pl.BlockSpec((1, 4, TH, Wp), lambda n, t: (n, 0, t, 0)),
            # 8-row bottom halo (same array, offset BlockSpec)
            pl.BlockSpec((1, 4, 8, Wp), lambda n, t: (n, 0, (t + 1) * (TH // 8), 0)),
        ],
        out_specs=pl.BlockSpec((1, 12, TH, W), lambda n, t: (n, 0, t, 0)),
        scratch_shapes=[pltpu.VMEM((4, 16, Wp), jnp.float32)],
        compiler_params=pltpu.CompilerParams(
            dimension_semantics=("parallel", "parallel"),
            vmem_limit_bytes=vmem_limit,
        ),
    )(x_pad, x_pad)

    # TODO(synk): fuse this quarter->full-res pixel interleave into the kernel
    # (in-kernel lane/sublane interleave) to save one full-res HBM round trip.
    out_q = out_q[:, :, :H, :]
    out = out_q.reshape(N, 3, 2, 2, H, W).transpose(0, 1, 4, 2, 5, 3)
    return out.reshape(N, 3, 2 * H, 2 * W)


# --------------------------------------------------------------------------
# Pure-JAX reference (direct port of the PyTorch forward) for validation
# --------------------------------------------------------------------------
def _pixel_shuffle(x, r):
    N, C, H, W = x.shape
    x = x.reshape(N, C // (r * r), r, r, H, W)
    x = x.transpose(0, 1, 4, 2, 5, 3)
    return x.reshape(N, C // (r * r), H * r, W * r)


def _conv5(x, k):
    return lax.conv_general_dilated(
        x, jnp.asarray(k).reshape(1, 1, 5, 5),
        window_strides=(2, 2), padding=((2, 2), (2, 2)),
        dimension_numbers=('NCHW', 'OIHW', 'NCHW'),
        precision=lax.Precision.HIGHEST)


def demosaic_malvar_ref(x):
    K = _base_kernels()
    X = _pixel_shuffle(x, 2)
    g00 = _conv5(X, K['g_at_r'])
    g01 = X[:, :, 0::2, 0::2]
    g10 = X[:, :, 1::2, 1::2]
    g11 = _conv5(X[:, :, ::-1, ::-1], K['g_at_b'])[:, :, ::-1, ::-1]
    g = _pixel_shuffle(jnp.concatenate([g00, g01, g10, g11], axis=1), 2)
    r00 = X[:, :, 0::2, 1::2]
    r01 = _conv5(X[:, :, :, ::-1], K['r_at_g1'])[:, :, :, ::-1]
    r10 = _conv5(X[:, :, ::-1, :], K['r_at_g2'])[:, :, ::-1, :]
    r11 = _conv5(X[:, :, ::-1, ::-1], K['r_at_b'])[:, :, ::-1, ::-1]
    r = _pixel_shuffle(jnp.concatenate([r00, r01, r10, r11], axis=1), 2)
    b00 = _conv5(X, K['b_at_r'])
    b01 = _conv5(X[:, :, :, ::-1], K['b_at_g1'])[:, :, :, ::-1]
    b10 = _conv5(X[:, :, ::-1, :], K['b_at_g2'])[:, :, ::-1, :]
    b11 = X[:, :, 1::2, 0::2]
    b = _pixel_shuffle(jnp.concatenate([b00, b01, b10, b11], axis=1), 2)
    return jnp.concatenate([b, g, r], axis=1)


# --------------------------------------------------------------------------
if __name__ == "__main__":
    # Single-tile path (N=2 -> no forced extra grid step), main + tail passes.
    x = jax.random.normal(jax.random.PRNGKey(0), (2, 4, 16, 16), dtype=jnp.float32)
    out = jax.block_until_ready(demosaic_malvar_pallas(x))
    assert out.shape == (2, 3, 32, 32) and out.dtype == jnp.float32
    ref = jax.block_until_ready(demosaic_malvar_ref(x))
    np.testing.assert_allclose(np.asarray(out), np.asarray(ref), rtol=1e-3, atol=1e-3)

    # Multi-tile path: row tiling with halo, non-multiple-of-8 height, crop.
    x2 = jax.random.normal(jax.random.PRNGKey(1), (1, 4, 30, 24), dtype=jnp.float32)
    out2 = jax.block_until_ready(demosaic_malvar_pallas(x2, tile_rows=16))
    assert out2.shape == (1, 3, 60, 48)
    ref2 = jax.block_until_ready(demosaic_malvar_ref(x2))
    np.testing.assert_allclose(np.asarray(out2), np.asarray(ref2), rtol=1e-3, atol=1e-3)

    # Single-image default path: forces >= 2 grid steps (TH=8, tail-only tiles).
    x3 = jax.random.normal(jax.random.PRNGKey(2), (1, 4, 16, 16), dtype=jnp.float32)
    out3 = jax.block_until_ready(demosaic_malvar_pallas(x3))
    ref3 = jax.block_until_ready(demosaic_malvar_ref(x3))
    np.testing.assert_allclose(np.asarray(out3), np.asarray(ref3), rtol=1e-3, atol=1e-3)

    print("KERNEL_OK")
</pallas_src>

<mosaic_0001>
module attributes {stable_mosaic.version = 11 : i64} {
  func.func @kernel(%arg0: i32, %arg1: i32, %arg2: memref<1x4x16x18xf32, #tpu.memory_space<vmem>>, %arg3: memref<1x4x8x18xf32, #tpu.memory_space<vmem>>, %arg4: memref<1x12x16x16xf32, #tpu.memory_space<vmem>>, %arg5: memref<4x16x18xf32, #tpu.memory_space<vmem>>) attributes {dimension_semantics = [#tpu.dimension_semantics<parallel>, #tpu.dimension_semantics<parallel>], iteration_bounds = array<i64: 2, 1>, scalar_prefetch = 0 : i64, scratch_operands = 1 : i64, tpu.core_type = #tpu.core_type<tc>, window_params = [{transform_indices = @transform_0, window_bounds = array<i64: 1, 4, 16, 18>}, {transform_indices = @transform_1, window_bounds = array<i64: 1, 4, 8, 18>}, {transform_indices = @transform_2, window_bounds = array<i64: 1, 12, 16, 16>}]} {
    %c0 = arith.constant 0 : index
    %c0_0 = arith.constant 0 : index
    %c8 = arith.constant 8 : index
    %c0_1 = arith.constant 0 : index
    %0 = vector.load %arg2[%c0, %c0_0, %c8, %c0_1] : memref<1x4x16x18xf32, #tpu.memory_space<vmem>>, vector<1x4x8x18xf32>
    %1 = vector.shape_cast %0 : vector<1x4x8x18xf32> to vector<4x8x18xf32>
    %c0_2 = arith.constant 0 : index
    %c0_3 = arith.constant 0 : index
    %c0_4 = arith.constant 0 : index
    %2 = vector.load %arg5[%c0_2, %c0_3, %c0_4] : memref<4x16x18xf32, #tpu.memory_space<vmem>>, vector<4x8x18xf32>
    tpu.vector_store %arg5[%c0_2, %c0_3, %c0_4], %1 {strides = array<i32>} : memref<4x16x18xf32, #tpu.memory_space<vmem>>, vector<4x8x18xf32>,
    %c0_5 = arith.constant 0 : index
    %c0_6 = arith.constant 0 : index
    %c0_7 = arith.constant 0 : index
    %c0_8 = arith.constant 0 : index
    %3 = vector.load %arg3[%c0_5, %c0_6, %c0_7, %c0_8] : memref<1x4x8x18xf32, #tpu.memory_space<vmem>>, vector<1x4x8x18xf32>
    %4 = vector.shape_cast %3 : vector<1x4x8x18xf32> to vector<4x8x18xf32>
    %c0_9 = arith.constant 0 : index
    %c8_10 = arith.constant 8 : index
    %c0_11 = arith.constant 0 : index
    %5 = vector.load %arg5[%c0_9, %c8_10, %c0_11] : memref<4x16x18xf32, #tpu.memory_space<vmem>>, vector<4x8x18xf32>
    tpu.vector_store %arg5[%c0_9, %c8_10, %c0_11], %4 {strides = array<i32>} : memref<4x16x18xf32, #tpu.memory_space<vmem>>, vector<4x8x18xf32>,
    %c0_12 = arith.constant 0 : index
    %c0_13 = arith.constant 0 : index
    %c0_14 = arith.constant 0 : index
    %c1 = arith.constant 1 : index
    %6 = vector.load %arg2[%c0_12, %c0_13, %c0_14, %c1] : memref<1x4x16x18xf32, #tpu.memory_space<vmem>>, vector<1x1x8x16xf32>
    %7 = vector.shape_cast %6 : vector<1x1x8x16xf32> to vector<8x16xf32>
    %c0_15 = arith.constant 0 : index
    %c0_16 = arith.constant 0 : index
    %c1_17 = arith.constant 1 : index
    %c0_18 = arith.constant 0 : index
    %8 = vector.load %arg2[%c0_15, %c0_16, %c1_17, %c0_18] : memref<1x4x16x18xf32, #tpu.memory_space<vmem>>, vector<1x1x8x16xf32>
    %9 = vector.shape_cast %8 : vector<1x1x8x16xf32> to vector<8x16xf32>
    %10 = arith.addf %7, %9 : vector<8x16xf32>
    %c0_19 = arith.constant 0 : index
    %c0_20 = arith.constant 0 : index
    %c1_21 = arith.constant 1 : index
    %c2 = arith.constant 2 : index
    %11 = vector.load %arg2[%c0_19, %c0_20, %c1_21, %c2] : memref<1x4x16x18xf32, #tpu.memory_space<vmem>>, vector<1x1x8x16xf32>
    %12 = vector.shape_cast %11 : vector<1x1x8x16xf32> to vector<8x16xf32>
    %13 = arith.addf %10, %12 : vector<8x16xf32>
    %c0_22 = arith.constant 0 : index
    %c0_23 = arith.constant 0 : index
    %c2_24 = arith.constant 2 : index
    %c1_25 = arith.constant 1 : index
    %14 = vector.load %arg2[%c0_22, %c0_23, %c2_24, %c1_25] : memref<1x4x16x18xf32, #tpu.memory_space<vmem>>, vector<1x1x8x16xf32>
    %15 = vector.shape_cast %14 : vector<1x1x8x16xf32> to vector<8x16xf32>
    %16 = arith.addf %13, %15 : vector<8x16xf32>
    %cst = arith.constant -1.875000e-01 : f32
    %17 = vector.broadcast %cst : f32 to vector<8x16xf32>
    %18 = arith.mulf %16, %17 : vector<8x16xf32>
    %c0_26 = arith.constant 0 : index
    %c3 = arith.constant 3 : index
    %c0_27 = arith.constant 0 : index
    %c0_28 = arith.constant 0 : index
    %19 = vector.load %arg2[%c0_26, %c3, %c0_27, %c0_28] : memref<1x4x16x18xf32, #tpu.memory_space<vmem>>, vector<1x1x8x16xf32>
    %20 = vector.shape_cast %19 : vector<1x1x8x16xf32> to vector<8x16xf32>
    %c0_29 = arith.constant 0 : index
    %c3_30 = arith.constant 3 : index
    %c0_31 = arith.constant 0 : index
    %c1_32 = arith.constant 1 : index
    %21 = vector.load %arg2[%c0_29, %c3_30, %c0_31, %c1_32] : memref<1x4x16x18xf32, #tpu.memory_space<vmem>>, vector<1x1x8x16xf32>
    %22 = vector.shape_cast %21 : vector<1x1x8x16xf32> to vector<8x16xf32>
    %23 = arith.addf %20, %22 : vector<8x16xf32>
    %c0_33 = arith.constant 0 : index
    %c3_34 = arith.constant 3 : index
    %c1_35 = arith.constant 1 : index
    %c0_36 = arith.constant 0 : index
    %24 = vector.load %arg2[%c0_33, %c3_34, %c1_35, %c0_36] : memref<1x4x16x18xf32, #tpu.memory_space<vmem>>, vector<1x1x8x16xf32>
    %25 = vector.shape_cast %24 : vector<1x1x8x16xf32> to vector<8x16xf32>
    %26 = arith.addf %23, %25 : vector<8x16xf32>
    %c0_37 = arith.constant 0 : index
    %c3_38 = arith.constant 3 : index
    %c1_39 = arith.constant 1 : index
    %c1_40 = arith.constant 1 : index
    %27 = vector.load %arg2[%c0_37, %c3_38, %c1_39, %c1_40] : memref<1x4x16x18xf32, #tpu.memory_space<vmem>>, vector<1x1x8x16xf32>
    %28 = vector.shape_cast %27 : vector<1x1x8x16xf32> to vector<8x16xf32>
    %29 = arith.addf %26, %28 : vector<8x16xf32>
    %cst_41 = arith.constant 2.500000e-01 : f32
    %30 = vector.broadcast %cst_41 : f32 to vector<8x16xf32>
    %31 = arith.mulf %29, %30 : vector<8x16xf32>
    %32 = arith.addf %18, %31 : vector<8x16xf32>
    %c0_42 = arith.constant 0 : index
    %c0_43 = arith.constant 0 : index
    %c1_44 = arith.constant 1 : index
    %c1_45 = arith.constant 1 : index
    %33 = vector.load %arg2[%c0_42, %c0_43, %c1_44, %c1_45] : memref<1x4x16x18xf32, #tpu.memory_space<vmem>>, vector<1x1x8x16xf32>
    %34 = vector.shape_cast %33 : vector<1x1x8x16xf32> to vector<8x16xf32>
    %cst_46 = arith.constant 7.500000e-01 : f32
    %35 = vector.broadcast %cst_46 : f32 to vector<8x16xf32>
    %36 = arith.mulf %34, %35 : vector<8x16xf32>
    %37 = arith.addf %32, %36 : vector<8x16xf32>
    %c0_47 = arith.constant 0 : index
    %c0_48 = arith.constant 0 : index
    %c0_49 = arith.constant 0 : index
    %c0_50 = arith.constant 0 : index
    %38 = vector.load %arg4[%c0_47, %c0_48, %c0_49, %c0_50] : memref<1x12x16x16xf32, #tpu.memory_space<vmem>>, vector<1x1x8x16xf32>
    %39 = vector.shape_cast %38 : vector<1x1x8x16xf32> to vector<8x16xf32>
    %40 = vector.shape_cast %37 : vector<8x16xf32> to vector<1x1x8x16xf32>
    tpu.vector_store %arg4[%c0_47, %c0_48, %c0_49, %c0_50], %40 {strides = array<i32>} : memref<1x12x16x16xf32, #tpu.memory_space<vmem>>, vector<1x1x8x16xf32>,
    %c0_51 = arith.constant 0 : index
    %c1_52 = arith.constant 1 : index
    %c0_53 = arith.constant 0 : index
    %c1_54 = arith.constant 1 : index
    %41 = vector.load %arg2[%c0_51, %c1_52, %c0_53, %c1_54] : memref<1x4x16x18xf32, #tpu.memory_space<vmem>>, vector<1x1x8x16xf32>
    %42 = vector.shape_cast %41 : vector<1x1x8x16xf32> to vector<8x16xf32>
    %c0_55 = arith.constant 0 : index
    %c2_56 = arith.constant 2 : index
    %c0_57 = arith.constant 0 : index
    %c1_58 = arith.constant 1 : index
    %43 = vector.load %arg2[%c0_55, %c2_56, %c0_57, %c1_58] : memref<1x4x16x18xf32, #tpu.memory_space<vmem>>, vector<1x1x8x16xf32>
    %44 = vector.shape_cast %43 : vector<1x1x8x16xf32> to vector<8x16xf32>
    %45 = arith.addf %42, %44 : vector<8x16xf32>
    %c0_59 = arith.constant 0 : index
    %c2_60 = arith.constant 2 : index
    %c0_61 = arith.constant 0 : index
    %c2_62 = arith.constant 2 : index
    %46 = vector.load %arg2[%c0_59, %c2_60, %c0_61, %c2_62] : memref<1x4x16x18xf32, #tpu.memory_space<vmem>>, vector<1x1x8x16xf32>
    %47 = vector.shape_cast %46 : vector<1x1x8x16xf32> to vector<8x16xf32>
    %48 = arith.addf %45, %47 : vector<8x16xf32>
    %c0_63 = arith.constant 0 : index
    %c2_64 = arith.constant 2 : index
    %c1_65 = arith.constant 1 : index
    %c1_66 = arith.constant 1 : index
    %49 = vector.load %arg2[%c0_63, %c2_64, %c1_65, %c1_66] : memref<1x4x16x18xf32, #tpu.memory_space<vmem>>, vector<1x1x8x16xf32>
    %50 = vector.shape_cast %49 : vector<1x1x8x16xf32> to vector<8x16xf32>
    %51 = arith.addf %48, %50 : vector<8x16xf32>
    %c0_67 = arith.constant 0 : index
    %c2_68 = arith.constant 2 : index
    %c1_69 = arith.constant 1 : index
    %c2_70 = arith.constant 2 : index
    %52 = vector.load %arg2[%c0_67, %c2_68, %c1_69, %c2_70] : memref<1x4x16x18xf32, #tpu.memory_space<vmem>>, vector<1x1x8x16xf32>
    %53 = vector.shape_cast %52 : vector<1x1x8x16xf32> to vector<8x16xf32>
    %54 = arith.addf %51, %53 : vector<8x16xf32>
    %c0_71 = arith.constant 0 : index
    %c1_72 = arith.constant 1 : index
    %c2_73 = arith.constant 2 : index
    %c1_74 = arith.constant 1 : index
    %55 = vector.load %arg2[%c0_71, %c1_72, %c2_73, %c1_74] : memref<1x4x16x18xf32, #tpu.memory_space<vmem>>, vector<1x1x8x16xf32>
    %56 = vector.shape_cast %55 : vector<1x1x8x16xf32> to vector<8x16xf32>
    %57 = arith.addf %54, %56 : vector<8x16xf32>
    %cst_75 = arith.constant -1.250000e-01 : f32
    %58 = vector.broadcast %cst_75 : f32 to vector<8x16xf32>
    %59 = arith.mulf %57, %58 : vector<8x16xf32>
    %c0_76 = arith.constant 0 : index
    %c1_77 = arith.constant 1 : index
    %c1_78 = arith.constant 1 : index
    %c0_79 = arith.constant 0 : index
    %60 = vector.load %arg2[%c0_76, %c1_77, %c1_78, %c0_79] : memref<1x4x16x18xf32, #tpu.memory_space<vmem>>, vector<1x1x8x16xf32>
    %61 = vector.shape_cast %60 : vector<1x1x8x16xf32> to vector<8x16xf32>
    %c0_80 = arith.constant 0 : index
    %c1_81 = arith.constant 1 : index
    %c1_82 = arith.constant 1 : index
    %c2_83 = arith.constant 2 : index
    %62 = vector.load %arg2[%c0_80, %c1_81, %c1_82, %c2_83] : memref<1x4x16x18xf32, #tpu.memory_space<vmem>>, vector<1x1x8x16xf32>
    %63 = vector.shape_cast %62 : vector<1x1x8x16xf32> to vector<8x16xf32>
    %64 = arith.addf %61, %63 : vector<8x16xf32>
    %cst_84 = arith.constant 6.250000e-02 : f32
    %65 = vector.broadcast %cst_84 : f32 to vector<8x16xf32>
    %66 = arith.mulf %64, %65 : vector<8x16xf32>
    %67 = arith.addf %59, %66 : vector<8x16xf32>
    %c0_85 = arith.constant 0 : index
    %c3_86 = arith.constant 3 : index
    %c0_87 = arith.constant 0 : index
    %c1_88 = arith.constant 1 : index
    %68 = vector.load %arg2[%c0_85, %c3_86, %c0_87, %c1_88] : memref<1x4x16x18xf32, #tpu.memory_space<vmem>>, vector<1x1x8x16xf32>
    %69 = vector.shape_cast %68 : vector<1x1x8x16xf32> to vector<8x16xf32>
    %c0_89 = arith.constant 0 : index
    %c3_90 = arith.constant 3 : index
    %c1_91 = arith.constant 1 : index
    %c1_92 = arith.constant 1 : index
    %70 = vector.load %arg2[%c0_89, %c3_90, %c1_91, %c1_92] : memref<1x4x16x18xf32, #tpu.memory_space<vmem>>, vector<1x1x8x16xf32>
    %71 = vector.shape_cast %70 : vector<1x1x8x16xf32> to vector<8x16xf32>
    %72 = arith.addf %69, %71 : vector<8x16xf32>
    %cst_93 = arith.constant 5.000000e-01 : f32
    %73 = vector.broadcast %cst_93 : f32 to vector<8x16xf32>
    %74 = arith.mulf %72, %73 : vector<8x16xf32>
    %75 = arith.addf %67, %74 : vector<8x16xf32>
    %c0_94 = arith.constant 0 : index
    %c1_95 = arith.constant 1 : index
    %c1_96 = arith.constant 1 : index
    %c1_97 = arith.constant 1 : index
    %76 = vector.load %arg2[%c0_94, %c1_95, %c1_96, %c1_97] : memref<1x4x16x18xf32, #tpu.memory_space<vmem>>, vector<1x1x8x16xf32>
    %77 = vector.shape_cast %76 : vector<1x1x8x16xf32> to vector<8x16xf32>
    %cst_98 = arith.constant 6.250000e-01 : f32
    %78 = vector.broadcast %cst_98 : f32 to vector<8x16xf32>
    %79 = arith.mulf %77, %78 : vector<8x16xf32>
    %80 = arith.addf %75, %79 : vector<8x16xf32>
    %c0_99 = arith.constant 0 : index
    %c1_100 = arith.constant 1 : index
    %c0_101 = arith.constant 0 : index
    %c0_102 = arith.constant 0 : index
    %81 = vector.load %arg4[%c0_99, %c1_100, %c0_101, %c0_102] : memref<1x12x16x16xf32, #tpu.memory_space<vmem>>, vector<1x1x8x16xf32>
    %82 = vector.shape_cast %81 : vector<1x1x8x16xf32> to vector<8x16xf32>
    %83 = vector.shape_cast %80 : vector<8x16xf32> to vector<1x1x8x16xf32>
    tpu.vector_store %arg4[%c0_99, %c1_100, %c0_101, %c0_102], %83 {strides = array<i32>} : memref<1x12x16x16xf32, #tpu.memory_space<vmem>>, vector<1x1x8x16xf32>,
    %c0_103 = arith.constant 0 : index
    %c1_104 = arith.constant 1 : index
    %c1_105 = arith.constant 1 : index
    %c0_106 = arith.constant 0 : index
    %84 = vector.load %arg2[%c0_103, %c1_104, %c1_105, %c0_106] : memref<1x4x16x18xf32, #tpu.memory_space<vmem>>, vector<1x1x8x16xf32>
    %85 = vector.shape_cast %84 : vector<1x1x8x16xf32> to vector<8x16xf32>
    %c0_107 = arith.constant 0 : index
    %c1_108 = arith.constant 1 : index
    %c1_109 = arith.constant 1 : index
    %c1_110 = arith.constant 1 : index
    %86 = vector.load %arg2[%c0_107, %c1_108, %c1_109, %c1_110] : memref<1x4x16x18xf32, #tpu.memory_space<vmem>>, vector<1x1x8x16xf32>
    %87 = vector.shape_cast %86 : vector<1x1x8x16xf32> to vector<8x16xf32>
    %88 = arith.addf %85, %87 : vector<8x16xf32>
    %c0_111 = arith.constant 0 : index
    %c2_112 = arith.constant 2 : index
    %c1_113 = arith.constant 1 : index
    %c0_114 = arith.constant 0 : index
    %89 = vector.load %arg2[%c0_111, %c2_112, %c1_113, %c0_114] : memref<1x4x16x18xf32, #tpu.memory_space<vmem>>, vector<1x1x8x16xf32>
    %90 = vector.shape_cast %89 : vector<1x1x8x16xf32> to vector<8x16xf32>
    %91 = arith.addf %88, %90 : vector<8x16xf32>
    %c0_115 = arith.constant 0 : index
    %c2_116 = arith.constant 2 : index
    %c1_117 = arith.constant 1 : index
    %c2_118 = arith.constant 2 : index
    %92 = vector.load %arg2[%c0_115, %c2_116, %c1_117, %c2_118] : memref<1x4x16x18xf32, #tpu.memory_space<vmem>>, vector<1x1x8x16xf32>
    %93 = vector.shape_cast %92 : vector<1x1x8x16xf32> to vector<8x16xf32>
    %94 = arith.addf %91, %93 : vector<8x16xf32>
    %c0_119 = arith.constant 0 : index
    %c1_120 = arith.constant 1 : index
    %c2_121 = arith.constant 2 : index
    %c0_122 = arith.constant 0 : index
    %95 = vector.load %arg2[%c0_119, %c1_120, %c2_121, %c0_122] : memref<1x4x16x18xf32, #tpu.memory_space<vmem>>, vector<1x1x8x16xf32>
    %96 = vector.shape_cast %95 : vector<1x1x8x16xf32> to vector<8x16xf32>
    %97 = arith.addf %94, %96 : vector<8x16xf32>
    %c0_123 = arith.constant 0 : index
    %c1_124 = arith.constant 1 : index
    %c2_125 = arith.constant 2 : index
    %c1_126 = arith.constant 1 : index
    %98 = vector.load %arg2[%c0_123, %c1_124, %c2_125, %c1_126] : memref<1x4x16x18xf32, #tpu.memory_space<vmem>>, vector<1x1x8x16xf32>
    %99 = vector.shape_cast %98 : vector<1x1x8x16xf32> to vector<8x16xf32>
    %100 = arith.addf %97, %99 : vector<8x16xf32>
    %cst_127 = arith.constant -1.250000e-01 : f32
    %101 = vector.broadcast %cst_127 : f32 to vector<8x16xf32>
    %102 = arith.mulf %100, %101 : vector<8x16xf32>
    %c0_128 = arith.constant 0 : index
    %c2_129 = arith.constant 2 : index
    %c0_130 = arith.constant 0 : index
    %c1_131 = arith.constant 1 : index
    %103 = vector.load %arg2[%c0_128, %c2_129, %c0_130, %c1_131] : memref<1x4x16x18xf32, #tpu.memory_space<vmem>>, vector<1x1x8x16xf32>
    %104 = vector.shape_cast %103 : vector<1x1x8x16xf32> to vector<8x16xf32>
    %c0_132 = arith.constant 0 : index
    %c2_133 = arith.constant 2 : index
    %c2_134 = arith.constant 2 : index
    %c1_135 = arith.constant 1 : index
    %105 = vector.load %arg2[%c0_132, %c2_133, %c2_134, %c1_135] : memref<1x4x16x18xf32, #tpu.memory_space<vmem>>, vector<1x1x8x16xf32>
    %106 = vector.shape_cast %105 : vector<1x1x8x16xf32> to vector<8x16xf32>
    %107 = arith.addf %104, %106 : vector<8x16xf32>
    %cst_136 = arith.constant 6.250000e-02 : f32
    %108 = vector.broadcast %cst_136 : f32 to vector<8x16xf32>
    %109 = arith.mulf %107, %108 : vector<8x16xf32>
    %110 = arith.addf %102, %109 : vector<8x16xf32>
    %c0_137 = arith.constant 0 : index
    %c3_138 = arith.constant 3 : index
    %c1_139 = arith.constant 1 : index
    %c0_140 = arith.constant 0 : index
    %111 = vector.load %arg2[%c0_137, %c3_138, %c1_139, %c0_140] : memref<1x4x16x18xf32, #tpu.memory_space<vmem>>, vector<1x1x8x16xf32>
    %112 = vector.shape_cast %111 : vector<1x1x8x16xf32> to vector<8x16xf32>
    %c0_141 = arith.constant 0 : index
    %c3_142 = arith.constant 3 : index
    %c1_143 = arith.constant 1 : index
    %c1_144 = arith.constant 1 : index
    %113 = vector.load %arg2[%c0_141, %c3_142, %c1_143, %c1_144] : memref<1x4x16x18xf32, #tpu.memory_space<vmem>>, vector<1x1x8x16xf32>
    %114 = vector.shape_cast %113 : vector<1x1x8x16xf32> to vector<8x16xf32>
    %115 = arith.addf %112, %114 : vector<8x16xf32>
    %cst_145 = arith.constant 5.000000e-01 : f32
    %116 = vector.broadcast %cst_145 : f32 to vector<8x16xf32>
    %117 = arith.mulf %115, %116 : vector<8x16xf32>
    %118 = arith.addf %110, %117 : vector<8x16xf32>
    %c0_146 = arith.constant 0 : index
    %c2_147 = arith.constant 2 : index
    %c1_148 = arith.constant 1 : index
    %c1_149 = arith.constant 1 : index
    %119 = vector.load %arg2[%c0_146, %c2_147, %c1_148, %c1_149] : memref<1x4x16x18xf32, #tpu.memory_space<vmem>>, vector<1x1x8x16xf32>
    %120 = vector.shape_cast %119 : vector<1x1x8x16xf32> to vector<8x16xf32>
    %cst_150 = arith.constant 6.250000e-01 : f32
    %121 = vector.broadcast %cst_150 : f32 to vector<8x16xf32>
    %122 = arith.mulf %120, %121 : vector<8x16xf32>
    %123 = arith.addf %118, %122 : vector<8x16xf32>
    %c0_151 = arith.constant 0 : index
    %c2_152 = arith.constant 2 : index
    %c0_153 = arith.constant 0 : index
    %c0_154 = arith.constant 0 : index
    %124 = vector.load %arg4[%c0_151, %c2_152, %c0_153, %c0_154] : memref<1x12x16x16xf32, #tpu.memory_space<vmem>>, vector<1x1x8x16xf32>
    %125 = vector.shape_cast %124 : vector<1x1x8x16xf32> to vector<8x16xf32>
    %126 = vector.shape_cast %123 : vector<8x16xf32> to vector<1x1x8x16xf32>
    tpu.vector_store %arg4[%c0_151, %c2_152, %c0_153, %c0_154], %126 {strides = array<i32>} : memref<1x12x16x16xf32, #tpu.memory_space<vmem>>, vector<1x1x8x16xf32>,
    %c0_155 = arith.constant 0 : index
    %c2_156 = arith.constant 2 : index
    %c1_157 = arith.constant 1 : index
    %c1_158 = arith.constant 1 : index
    %127 = vector.load %arg2[%c0_155, %c2_156, %c1_157, %c1_158] : memref<1x4x16x18xf32, #tpu.memory_space<vmem>>, vector<1x1x8x16xf32>
    %128 = vector.shape_cast %127 : vector<1x1x8x16xf32> to vector<8x16xf32>
    %c0_159 = arith.constant 0 : index
    %c3_160 = arith.constant 3 : index
    %c0_161 = arith.constant 0 : index
    %c0_162 = arith.constant 0 : index
    %129 = vector.load %arg4[%c0_159, %c3_160, %c0_161, %c0_162] : memref<1x12x16x16xf32, #tpu.memory_space<vmem>>, vector<1x1x8x16xf32>
    %130 = vector.shape_cast %129 : vector<1x1x8x16xf32> to vector<8x16xf32>
    %131 = vector.shape_cast %128 : vector<8x16xf32> to vector<1x1x8x16xf32>
    tpu.vector_store %arg4[%c0_159, %c3_160, %c0_161, %c0_162], %131 {strides = array<i32>} : memref<1x12x16x16xf32, #tpu.memory_space<vmem>>, vector<1x1x8x16xf32>,
    %c0_163 = arith.constant 0 : index
    %c0_164 = arith.constant 0 : index
    %c0_165 = arith.constant 0 : index
    %c1_166 = arith.constant 1 : index
    %132 = vector.load %arg2[%c0_163, %c0_164, %c0_165, %c1_166] : memref<1x4x16x18xf32, #tpu.memory_space<vmem>>, vector<1x1x8x16xf32>
    %133 = vector.shape_cast %132 : vector<1x1x8x16xf32> to vector<8x16xf32>
    %c0_167 = arith.constant 0 : index
    %c0_168 = arith.constant 0 : index
    %c1_169 = arith.constant 1 : index
    %c0_170 = arith.constant 0 : index
    %134 = vector.load %arg2[%c0_167, %c0_168, %c1_169, %c0_170] : memref<1x4x16x18xf32, #tpu.memory_space<vmem>>, vector<1x1x8x16xf32>
    %135 = vector.shape_cast %134 : vector<1x1x8x16xf32> to vector<8x16xf32>
    %136 = arith.addf %133, %135 : vector<8x16xf32>
    %c0_171 = arith.constant 0 : index
    %c0_172 = arith.constant 0 : index
    %c1_173 = arith.constant 1 : index
    %c2_174 = arith.constant 2 : index
    %137 = vector.load %arg2[%c0_171, %c0_172, %c1_173, %c2_174] : memref<1x4x16x18xf32, #tpu.memory_space<vmem>>, vector<1x1x8x16xf32>
    %138 = vector.shape_cast %137 : vector<1x1x8x16xf32> to vector<8x16xf32>
    %139 = arith.addf %136, %138 : vector<8x16xf32>
    %c0_175 = arith.constant 0 : index
    %c0_176 = arith.constant 0 : index
    %c2_177 = arith.constant 2 : index
    %c1_178 = arith.constant 1 : index
    %140 = vector.load %arg2[%c0_175, %c0_176, %c2_177, %c1_178] : memref<1x4x16x18xf32, #tpu.memory_space<vmem>>, vector<1x1x8x16xf32>
    %141 = vector.shape_cast %140 : vector<1x1x8x16xf32> to vector<8x16xf32>
    %142 = arith.addf %139, %141 : vector<8x16xf32>
    %cst_179 = arith.constant -1.250000e-01 : f32
    %143 = vector.broadcast %cst_179 : f32 to vector<8x16xf32>
    %144 = arith.mulf %142, %143 : vector<8x16xf32>
    %c0_180 = arith.constant 0 : index
    %c2_181 = arith.constant 2 : index
    %c0_182 = arith.constant 0 : index
    %c1_183 = arith.constant 1 : index
    %145 = vector.load %arg2[%c0_180, %c2_181, %c0_182, %c1_183] : memref<1x4x16x18xf32, #tpu.memory_space<vmem>>, vector<1x1x8x16xf32>
    %146 = vector.shape_cast %145 : vector<1x1x8x16xf32> to vector<8x16xf32>
    %c0_184 = arith.constant 0 : index
    %c1_185 = arith.constant 1 : index
    %c1_186 = arith.constant 1 : index
    %c0_187 = arith.constant 0 : index
    %147 = vector.load %arg2[%c0_184, %c1_185, %c1_186, %c0_187] : memref<1x4x16x18xf32, #tpu.memory_space<vmem>>, vector<1x1x8x16xf32>
    %148 = vector.shape_cast %147 : vector<1x1x8x16xf32> to vector<8x16xf32>
    %149 = arith.addf %146, %148 : vector<8x16xf32>
    %c0_188 = arith.constant 0 : index
    %c1_189 = arith.constant 1 : index
    %c1_190 = arith.constant 1 : index
    %c1_191 = arith.constant 1 : index
    %150 = vector.load %arg2[%c0_188, %c1_189, %c1_190, %c1_191] : memref<1x4x16x18xf32, #tpu.memory_space<vmem>>, vector<1x1x8x16xf32>
    %151 = vector.shape_cast %150 : vector<1x1x8x16xf32> to vector<8x16xf32>
    %152 = arith.addf %149, %151 : vector<8x16xf32>
    %c0_192 = arith.constant 0 : index
    %c2_193 = arith.constant 2 : index
    %c1_194 = arith.constant 1 : index
    %c1_195 = arith.constant 1 : index
    %153 = vector.load %arg2[%c0_192, %c2_193, %c1_194, %c1_195] : memref<1x4x16x18xf32, #tpu.memory_space<vmem>>, vector<1x1x8x16xf32>
    %154 = vector.shape_cast %153 : vector<1x1x8x16xf32> to vector<8x16xf32>
    %155 = arith.addf %152, %154 : vector<8x16xf32>
    %cst_196 = arith.constant 2.500000e-01 : f32
    %156 = vector.broadcast %cst_196 : f32 to vector<8x16xf32>
    %157 = arith.mulf %155, %156 : vector<8x16xf32>
    %158 = arith.addf %144, %157 : vector<8x16xf32>
    %c0_197 = arith.constant 0 : index
    %c0_198 = arith.constant 0 : index
    %c1_199 = arith.constant 1 : index
    %c1_200 = arith.constant 1 : index
    %159 = vector.load %arg2[%c0_197, %c0_198, %c1_199, %c1_200] : memref<1x4x16x18xf32, #tpu.memory_space<vmem>>, vector<1x1x8x16xf32>
    %160 = vector.shape_cast %159 : vector<1x1x8x16xf32> to vector<8x16xf32>
    %cst_201 = arith.constant 5.000000e-01 : f32
    %161 = vector.broadcast %cst_201 : f32 to vector<8x16xf32>
    %162 = arith.mulf %160, %161 : vector<8x16xf32>
    %163 = arith.addf %158, %162 : vector<8x16xf32>
    %c0_202 = arith.constant 0 : index
    %c4 = arith.constant 4 : index
    %c0_203 = arith.constant 0 : index
    %c0_204 = arith.constant 0 : index
    %164 = vector.load %arg4[%c0_202, %c4, %c0_203, %c0_204] : memref<1x12x16x16xf32, #tpu.memory_space<vmem>>, vector<1x1x8x16xf32>
    %165 = vector.shape_cast %164 : vector<1x1x8x16xf32> to vector<8x16xf32>
    %166 = vector.shape_cast %163 : vector<8x16xf32> to vector<1x1x8x16xf32>
    tpu.vector_store %arg4[%c0_202, %c4, %c0_203, %c0_204], %166 {strides = array<i32>} : memref<1x12x16x16xf32, #tpu.memory_space<vmem>>, vector<1x1x8x16xf32>,
    %c0_205 = arith.constant 0 : index
    %c0_206 = arith.constant 0 : index
    %c1_207 = arith.constant 1 : index
    %c1_208 = arith.constant 1 : index
    %167 = vector.load %arg2[%c0_205, %c0_206, %c1_207, %c1_208] : memref<1x4x16x18xf32, #tpu.memory_space<vmem>>, vector<1x1x8x16xf32>
    %168 = vector.shape_cast %167 : vector<1x1x8x16xf32> to vector<8x16xf32>
    %c0_209 = arith.constant 0 : index
    %c5 = arith.constant 5 : index
    %c0_210 = arith.constant 0 : index
    %c0_211 = arith.constant 0 : index
    %169 = vector.load %arg4[%c0_209, %c5, %c0_210, %c0_211] : memref<1x12x16x16xf32, #tpu.memory_space<vmem>>, vector<1x1x8x16xf32>
    %170 = vector.shape_cast %169 : vector<1x1x8x16xf32> to vector<8x16xf32>
    %171 = vector.shape_cast %168 : vector<8x16xf32> to vector<1x1x8x16xf32>
    tpu.vector_store %arg4[%c0_209, %c5, %c0_210, %c0_211], %171 {strides = array<i32>} : memref<1x12x16x16xf32, #tpu.memory_space<vmem>>, vector<1x1x8x16xf32>,
    %c0_212 = arith.constant 0 : index
    %c3_213 = arith.constant 3 : index
    %c1_214 = arith.constant 1 : index
    %c1_215 = arith.constant 1 : index
    %172 = vector.load %arg2[%c0_212, %c3_213, %c1_214, %c1_215] : memref<1x4x16x18xf32, #tpu.memory_space<vmem>>, vector<1x1x8x16xf32>
    %173 = vector.shape_cast %172 : vector<1x1x8x16xf32> to vector<8x16xf32>
    %c0_216 = arith.constant 0 : index
    %c6 = arith.constant 6 : index
    %c0_217 = arith.constant 0 : index
    %c0_218 = arith.constant 0 : index
    %174 = vector.load %arg4[%c0_216, %c6, %c0_217, %c0_218] : memref<1x12x16x16xf32, #tpu.memory_space<vmem>>, vector<1x1x8x16xf32>
    %175 = vector.shape_cast %174 : vector<1x1x8x16xf32> to vector<8x16xf32>
    %176 = vector.shape_cast %173 : vector<8x16xf32> to vector<1x1x8x16xf32>
    tpu.vector_store %arg4[%c0_216, %c6, %c0_217, %c0_218], %176 {strides = array<i32>} : memref<1x12x16x16xf32, #tpu.memory_space<vmem>>, vector<1x1x8x16xf32>,
    %c0_219 = arith.constant 0 : index
    %c3_220 = arith.constant 3 : index
    %c0_221 = arith.constant 0 : index
    %c1_222 = arith.constant 1 : index
    %177 = vector.load %arg2[%c0_219, %c3_220, %c0_221, %c1_222] : memref<1x4x16x18xf32, #tpu.memory_space<vmem>>, vector<1x1x8x16xf32>
    %178 = vector.shape_cast %177 : vector<1x1x8x16xf32> to vector<8x16xf32>
    %c0_223 = arith.constant 0 : index
    %c3_224 = arith.constant 3 : index
    %c1_225 = arith.constant 1 : index
    %c0_226 = arith.constant 0 : index
    %179 = vector.load %arg2[%c0_223, %c3_224, %c1_225, %c0_226] : memref<1x4x16x18xf32, #tpu.memory_space<vmem>>, vector<1x1x8x16xf32>
    %180 = vector.shape_cast %179 : vector<1x1x8x16xf32> to vector<8x16xf32>
    %181 = arith.addf %178, %180 : vector<8x16xf32>
    %c0_227 = arith.constant 0 : index
    %c3_228 = arith.constant 3 : index
    %c1_229 = arith.constant 1 : index
    %c2_230 = arith.constant 2 : index
    %182 = vector.load %arg2[%c0_227, %c3_228, %c1_229, %c2_230] : memref<1x4x16x18xf32, #tpu.memory_space<vmem>>, vector<1x1x8x16xf32>
    %183 = vector.shape_cast %182 : vector<1x1x8x16xf32> to vector<8x16xf32>
    %184 = arith.addf %181, %183 : vector<8x16xf32>
    %c0_231 = arith.constant 0 : index
    %c3_232 = arith.constant 3 : index
    %c2_233 = arith.constant 2 : index
    %c1_234 = arith.constant 1 : index
    %185 = vector.load %arg2[%c0_231, %c3_232, %c2_233, %c1_234] : memref<1x4x16x18xf32, #tpu.memory_space<vmem>>, vector<1x1x8x16xf32>
    %186 = vector.shape_cast %185 : vector<1x1x8x16xf32> to vector<8x16xf32>
    %187 = arith.addf %184, %186 : vector<8x16xf32>
    %cst_235 = arith.constant -1.250000e-01 : f32
    %188 = vector.broadcast %cst_235 : f32 to vector<8x16xf32>
    %189 = arith.mulf %187, %188 : vector<8x16xf32>
    %c0_236 = arith.constant 0 : index
    %c1_237 = arith.constant 1 : index
    %c1_238 = arith.constant 1 : index
    %c1_239 = arith.constant 1 : index
    %190 = vector.load %arg2[%c0_236, %c1_237, %c1_238, %c1_239] : memref<1x4x16x18xf32, #tpu.memory_space<vmem>>, vector<1x1x8x16xf32>
    %191 = vector.shape_cast %190 : vector<1x1x8x16xf32> to vector<8x16xf32>
    %c0_240 = arith.constant 0 : index
    %c2_241 = arith.constant 2 : index
    %c1_242 = arith.constant 1 : index
    %c1_243 = arith.constant 1 : index
    %192 = vector.load %arg2[%c0_240, %c2_241, %c1_242, %c1_243] : memref<1x4x16x18xf32, #tpu.memory_space<vmem>>, vector<1x1x8x16xf32>
    %193 = vector.shape_cast %192 : vector<1x1x8x16xf32> to vector<8x16xf32>
    %194 = arith.addf %191, %193 : vector<8x16xf32>
    %c0_244 = arith.constant 0 : index
    %c2_245 = arith.constant 2 : index
    %c1_246 = arith.constant 1 : index
    %c2_247 = arith.constant 2 : index
    %195 = vector.load %arg2[%c0_244, %c2_245, %c1_246, %c2_247] : memref<1x4x16x18xf32, #tpu.memory_space<vmem>>, vector<1x1x8x16xf32>
    %196 = vector.shape_cast %195 : vector<1x1x8x16xf32> to vector<8x16xf32>
    %197 = arith.addf %194, %196 : vector<8x16xf32>
    %c0_248 = arith.constant 0 : index
    %c1_249 = arith.constant 1 : index
    %c2_250 = arith.constant 2 : index
    %c1_251 = arith.constant 1 : index
    %198 = vector.load %arg2[%c0_248, %c1_249, %c2_250, %c1_251] : memref<1x4x16x18xf32, #tpu.memory_space<vmem>>, vector<1x1x8x16xf32>
    %199 = vector.shape_cast %198 : vector<1x1x8x16xf32> to vector<8x16xf32>
    %200 = arith.addf %197, %199 : vector<8x16xf32>
    %cst_252 = arith.constant 2.500000e-01 : f32
    %201 = vector.broadcast %cst_252 : f32 to vector<8x16xf32>
    %202 = arith.mulf %200, %201 : vector<8x16xf32>
    %203 = arith.addf %189, %202 : vector<8x16xf32>
    %c0_253 = arith.constant 0 : index
    %c3_254 = arith.constant 3 : index
    %c1_255 = arith.constant 1 : index
    %c1_256 = arith.constant 1 : index
    %204 = vector.load %arg2[%c0_253, %c3_254, %c1_255, %c1_256] : memref<1x4x16x18xf32, #tpu.memory_space<vmem>>, vector<1x1x8x16xf32>
    %205 = vector.shape_cast %204 : vector<1x1x8x16xf32> to vector<8x16xf32>
    %cst_257 = arith.constant 5.000000e-01 : f32
    %206 = vector.broadcast %cst_257 : f32 to vector<8x16xf32>
    %207 = arith.mulf %205, %206 : vector<8x16xf32>
    %208 = arith.addf %203, %207 : vector<8x16xf32>
    %c0_258 = arith.constant 0 : index
    %c7 = arith.constant 7 : index
    %c0_259 = arith.constant 0 : index
    %c0_260 = arith.constant 0 : index
    %209 = vector.load %arg4[%c0_258, %c7, %c0_259, %c0_260] : memref<1x12x16x16xf32, #tpu.memory_space<vmem>>, vector<1x1x8x16xf32>
    %210 = vector.shape_cast %209 : vector<1x1x8x16xf32> to vector<8x16xf32>
    %211 = vector.shape_cast %208 : vector<8x16xf32> to vector<1x1x8x16xf32>
    tpu.vector_store %arg4[%c0_258, %c7, %c0_259, %c0_260], %211 {strides = array<i32>} : memref<1x12x16x16xf32, #tpu.memory_space<vmem>>, vector<1x1x8x16xf32>,
    %c0_261 = arith.constant 0 : index
    %c1_262 = arith.constant 1 : index
    %c1_263 = arith.constant 1 : index
    %c1_264 = arith.constant 1 : index
    %212 = vector.load %arg2[%c0_261, %c1_262, %c1_263, %c1_264] : memref<1x4x16x18xf32, #tpu.memory_space<vmem>>, vector<1x1x8x16xf32>
    %213 = vector.shape_cast %212 : vector<1x1x8x16xf32> to vector<8x16xf32>
    %c0_265 = arith.constant 0 : index
    %c8_266 = arith.constant 8 : index
    %c0_267 = arith.constant 0 : index
    %c0_268 = arith.constant 0 : index
    %214 = vector.load %arg4[%c0_265, %c8_266, %c0_267, %c0_268] : memref<1x12x16x16xf32, #tpu.memory_space<vmem>>, vector<1x1x8x16xf32>
    %215 = vector.shape_cast %214 : vector<1x1x8x16xf32> to vector<8x16xf32>
    %216 = vector.shape_cast %213 : vector<8x16xf32> to vector<1x1x8x16xf32>
    tpu.vector_store %arg4[%c0_265, %c8_266, %c0_267, %c0_268], %216 {strides = array<i32>} : memref<1x12x16x16xf32, #tpu.memory_space<vmem>>, vector<1x1x8x16xf32>,
    %c0_269 = arith.constant 0 : index
    %c2_270 = arith.constant 2 : index
    %c0_271 = arith.constant 0 : index
    %c1_272 = arith.constant 1 : index
    %217 = vector.load %arg2[%c0_269, %c2_270, %c0_271, %c1_272] : memref<1x4x16x18xf32, #tpu.memory_space<vmem>>, vector<1x1x8x16xf32>
    %218 = vector.shape_cast %217 : vector<1x1x8x16xf32> to vector<8x16xf32>
    %c0_273 = arith.constant 0 : index
    %c2_274 = arith.constant 2 : index
    %c0_275 = arith.constant 0 : index
    %c2_276 = arith.constant 2 : index
    %219 = vector.load %arg2[%c0_273, %c2_274, %c0_275, %c2_276] : memref<1x4x16x18xf32, #tpu.memory_space<vmem>>, vector<1x1x8x16xf32>
    %220 = vector.shape_cast %219 : vector<1x1x8x16xf32> to vector<8x16xf32>
    %221 = arith.addf %218, %220 : vector<8x16xf32>
    %c0_277 = arith.constant 0 : index
    %c1_278 = arith.constant 1 : index
    %c1_279 = arith.constant 1 : index
    %c0_280 = arith.constant 0 : index
    %222 = vector.load %arg2[%c0_277, %c1_278, %c1_279, %c0_280] : memref<1x4x16x18xf32, #tpu.memory_space<vmem>>, vector<1x1x8x16xf32>
    %223 = vector.shape_cast %222 : vector<1x1x8x16xf32> to vector<8x16xf32>
    %224 = arith.addf %221, %223 : vector<8x16xf32>
    %c0_281 = arith.constant 0 : index
    %c1_282 = arith.constant 1 : index
    %c1_283 = arith.constant 1 : index
    %c2_284 = arith.constant 2 : index
    %225 = vector.load %arg2[%c0_281, %c1_282, %c1_283, %c2_284] : memref<1x4x16x18xf32, #tpu.memory_space<vmem>>, vector<1x1x8x16xf32>
    %226 = vector.shape_cast %225 : vector<1x1x8x16xf32> to vector<8x16xf32>
    %227 = arith.addf %224, %226 : vector<8x16xf32>
    %c0_285 = arith.constant 0 : index
    %c2_286 = arith.constant 2 : index
    %c1_287 = arith.constant 1 : index
    %c1_288 = arith.constant 1 : index
    %228 = vector.load %arg2[%c0_285, %c2_286, %c1_287, %c1_288] : memref<1x4x16x18xf32, #tpu.memory_space<vmem>>, vector<1x1x8x16xf32>
    %229 = vector.shape_cast %228 : vector<1x1x8x16xf32> to vector<8x16xf32>
    %230 = arith.addf %227, %229 : vector<8x16xf32>
    %c0_289 = arith.constant 0 : index
    %c2_290 = arith.constant 2 : index
    %c1_291 = arith.constant 1 : index
    %c2_292 = arith.constant 2 : index
    %231 = vector.load %arg2[%c0_289, %c2_290, %c1_291, %c2_292] : memref<1x4x16x18xf32, #tpu.memory_space<vmem>>, vector<1x1x8x16xf32>
    %232 = vector.shape_cast %231 : vector<1x1x8x16xf32> to vector<8x16xf32>
    %233 = arith.addf %230, %232 : vector<8x16xf32>
    %cst_293 = arith.constant -1.250000e-01 : f32
    %234 = vector.broadcast %cst_293 : f32 to vector<8x16xf32>
    %235 = arith.mulf %233, %234 : vector<8x16xf32>
    %c0_294 = arith.constant 0 : index
    %c1_295 = arith.constant 1 : index
    %c0_296 = arith.constant 0 : index
    %c1_297 = arith.constant 1 : index
    %236 = vector.load %arg2[%c0_294, %c1_295, %c0_296, %c1_297] : memref<1x4x16x18xf32, #tpu.memory_space<vmem>>, vector<1x1x8x16xf32>
    %237 = vector.shape_cast %236 : vector<1x1x8x16xf32> to vector<8x16xf32>
    %c0_298 = arith.constant 0 : index
    %c1_299 = arith.constant 1 : index
    %c2_300 = arith.constant 2 : index
    %c1_301 = arith.constant 1 : index
    %238 = vector.load %arg2[%c0_298, %c1_299, %c2_300, %c1_301] : memref<1x4x16x18xf32, #tpu.memory_space<vmem>>, vector<1x1x8x16xf32>
    %239 = vector.shape_cast %238 : vector<1x1x8x16xf32> to vector<8x16xf32>
    %240 = arith.addf %237, %239 : vector<8x16xf32>
    %cst_302 = arith.constant 6.250000e-02 : f32
    %241 = vector.broadcast %cst_302 : f32 to vector<8x16xf32>
    %242 = arith.mulf %240, %241 : vector<8x16xf32>
    %243 = arith.addf %235, %242 : vector<8x16xf32>
    %c0_303 = arith.constant 0 : index
    %c0_304 = arith.constant 0 : index
    %c1_305 = arith.constant 1 : index
    %c1_306 = arith.constant 1 : index
    %244 = vector.load %arg2[%c0_303, %c0_304, %c1_305, %c1_306] : memref<1x4x16x18xf32, #tpu.memory_space<vmem>>, vector<1x1x8x16xf32>
    %245 = vector.shape_cast %244 : vector<1x1x8x16xf32> to vector<8x16xf32>
    %c0_307 = arith.constant 0 : index
    %c0_308 = arith.constant 0 : index
    %c1_309 = arith.constant 1 : index
    %c2_310 = arith.constant 2 : index
    %246 = vector.load %arg2[%c0_307, %c0_308, %c1_309, %c2_310] : memref<1x4x16x18xf32, #tpu.memory_space<vmem>>, vector<1x1x8x16xf32>
    %247 = vector.shape_cast %246 : vector<1x1x8x16xf32> to vector<8x16xf32>
    %248 = arith.addf %245, %247 : vector<8x16xf32>
    %cst_311 = arith.constant 5.000000e-01 : f32
    %249 = vector.broadcast %cst_311 : f32 to vector<8x16xf32>
    %250 = arith.mulf %248, %249 : vector<8x16xf32>
    %251 = arith.addf %243, %250 : vector<8x16xf32>
    %c0_312 = arith.constant 0 : index
    %c1_313 = arith.constant 1 : index
    %c1_314 = arith.constant 1 : index
    %c1_315 = arith.constant 1 : index
    %252 = vector.load %arg2[%c0_312, %c1_313, %c1_314, %c1_315] : memref<1x4x16x18xf32, #tpu.memory_space<vmem>>, vector<1x1x8x16xf32>
    %253 = vector.shape_cast %252 : vector<1x1x8x16xf32> to vector<8x16xf32>
    %cst_316 = arith.constant 6.250000e-01 : f32
    %254 = vector.broadcast %cst_316 : f32 to vector<8x16xf32>
    %255 = arith.mulf %253, %254 : vector<8x16xf32>
    %256 = arith.addf %251, %255 : vector<8x16xf32>
    %c0_317 = arith.constant 0 : index
    %c9 = arith.constant 9 : index
    %c0_318 = arith.constant 0 : index
    %c0_319 = arith.constant 0 : index
    %257 = vector.load %arg4[%c0_317, %c9, %c0_318, %c0_319] : memref<1x12x16x16xf32, #tpu.memory_space<vmem>>, vector<1x1x8x16xf32>
    %258 = vector.shape_cast %257 : vector<1x1x8x16xf32> to vector<8x16xf32>
    %259 = vector.shape_cast %256 : vector<8x16xf32> to vector<1x1x8x16xf32>
    tpu.vector_store %arg4[%c0_317, %c9, %c0_318, %c0_319], %259 {strides = array<i32>} : memref<1x12x16x16xf32, #tpu.memory_space<vmem>>, vector<1x1x8x16xf32>,
    %c0_320 = arith.constant 0 : index
    %c2_321 = arith.constant 2 : index
    %c0_322 = arith.constant 0 : index
    %c1_323 = arith.constant 1 : index
    %260 = vector.load %arg2[%c0_320, %c2_321, %c0_322, %c1_323] : memref<1x4x16x18xf32, #tpu.memory_space<vmem>>, vector<1x1x8x16xf32>
    %261 = vector.shape_cast %260 : vector<1x1x8x16xf32> to vector<8x16xf32>
    %c0_324 = arith.constant 0 : index
    %c1_325 = arith.constant 1 : index
    %c1_326 = arith.constant 1 : index
    %c0_327 = arith.constant 0 : index
    %262 = vector.load %arg2[%c0_324, %c1_325, %c1_326, %c0_327] : memref<1x4x16x18xf32, #tpu.memory_space<vmem>>, vector<1x1x8x16xf32>
    %263 = vector.shape_cast %262 : vector<1x1x8x16xf32> to vector<8x16xf32>
    %264 = arith.addf %261, %263 : vector<8x16xf32>
    %c0_328 = arith.constant 0 : index
    %c1_329 = arith.constant 1 : index
    %c1_330 = arith.constant 1 : index
    %c1_331 = arith.constant 1 : index
    %265 = vector.load %arg2[%c0_328, %c1_329, %c1_330, %c1_331] : memref<1x4x16x18xf32, #tpu.memory_space<vmem>>, vector<1x1x8x16xf32>
    %266 = vector.shape_cast %265 : vector<1x1x8x16xf32> to vector<8x16xf32>
    %267 = arith.addf %264, %266 : vector<8x16xf32>
    %c0_332 = arith.constant 0 : index
    %c1_333 = arith.constant 1 : index
    %c2_334 = arith.constant 2 : index
    %c0_335 = arith.constant 0 : index
    %268 = vector.load %arg2[%c0_332, %c1_333, %c2_334, %c0_335] : memref<1x4x16x18xf32, #tpu.memory_space<vmem>>, vector<1x1x8x16xf32>
    %269 = vector.shape_cast %268 : vector<1x1x8x16xf32> to vector<8x16xf32>
    %270 = arith.addf %267, %269 : vector<8x16xf32>
    %c0_336 = arith.constant 0 : index
    %c1_337 = arith.constant 1 : index
    %c2_338 = arith.constant 2 : index
    %c1_339 = arith.constant 1 : index
    %271 = vector.load %arg2[%c0_336, %c1_337, %c2_338, %c1_339] : memref<1x4x16x18xf32, #tpu.memory_space<vmem>>, vector<1x1x8x16xf32>
    %272 = vector.shape_cast %271 : vector<1x1x8x16xf32> to vector<8x16xf32>
    %273 = arith.addf %270, %272 : vector<8x16xf32>
    %c0_340 = arith.constant 0 : index
    %c2_341 = arith.constant 2 : index
    %c2_342 = arith.constant 2 : index
    %c1_343 = arith.constant 1 : index
    %274 = vector.load %arg2[%c0_340, %c2_341, %c2_342, %c1_343] : memref<1x4x16x18xf32, #tpu.memory_space<vmem>>, vector<1x1x8x16xf32>
    %275 = vector.shape_cast %274 : vector<1x1x8x16xf32> to vector<8x16xf32>
    %276 = arith.addf %273, %275 : vector<8x16xf32>
    %cst_344 = arith.constant -1.250000e-01 : f32
    %277 = vector.broadcast %cst_344 : f32 to vector<8x16xf32>
    %278 = arith.mulf %276, %277 : vector<8x16xf32>
    %c0_345 = arith.constant 0 : index
    %c2_346 = arith.constant 2 : index
    %c1_347 = arith.constant 1 : index
    %c0_348 = arith.constant 0 : index
    %279 = vector.load %arg2[%c0_345, %c2_346, %c1_347, %c0_348] : memref<1x4x16x18xf32, #tpu.memory_space<vmem>>, vector<1x1x8x16xf32>
    %280 = vector.shape_cast %279 : vector<1x1x8x16xf32> to vector<8x16xf32>
    %c0_349 = arith.constant 0 : index
    %c2_350 = arith.constant 2 : index
    %c1_351 = arith.constant 1 : index
    %c2_352 = arith.constant 2 : index
    %281 = vector.load %arg2[%c0_349, %c2_350, %c1_351, %c2_352] : memref<1x4x16x18xf32, #tpu.memory_space<vmem>>, vector<1x1x8x16xf32>
    %282 = vector.shape_cast %281 : vector<1x1x8x16xf32> to vector<8x16xf32>
    %283 = arith.addf %280, %282 : vector<8x16xf32>
    %cst_353 = arith.constant 6.250000e-02 : f32
    %284 = vector.broadcast %cst_353 : f32 to vector<8x16xf32>
    %285 = arith.mulf %283, %284 : vector<8x16xf32>
    %286 = arith.addf %278, %285 : vector<8x16xf32>
    %c0_354 = arith.constant 0 : index
    %c0_355 = arith.constant 0 : index
    %c1_356 = arith.constant 1 : index
    %c1_357 = arith.constant 1 : index
    %287 = vector.load %arg2[%c0_354, %c0_355, %c1_356, %c1_357] : memref<1x4x16x18xf32, #tpu.memory_space<vmem>>, vector<1x1x8x16xf32>
    %288 = vector.shape_cast %287 : vector<1x1x8x16xf32> to vector<8x16xf32>
    %c0_358 = arith.constant 0 : index
    %c0_359 = arith.constant 0 : index
    %c2_360 = arith.constant 2 : index
    %c1_361 = arith.constant 1 : index
    %289 = vector.load %arg2[%c0_358, %c0_359, %c2_360, %c1_361] : memref<1x4x16x18xf32, #tpu.memory_space<vmem>>, vector<1x1x8x16xf32>
    %290 = vector.shape_cast %289 : vector<1x1x8x16xf32> to vector<8x16xf32>
    %291 = arith.addf %288, %290 : vector<8x16xf32>
    %cst_362 = arith.constant 5.000000e-01 : f32
    %292 = vector.broadcast %cst_362 : f32 to vector<8x16xf32>
    %293 = arith.mulf %291, %292 : vector<8x16xf32>
    %294 = arith.addf %286, %293 : vector<8x16xf32>
    %c0_363 = arith.constant 0 : index
    %c2_364 = arith.constant 2 : index
    %c1_365 = arith.constant 1 : index
    %c1_366 = arith.constant 1 : index
    %295 = vector.load %arg2[%c0_363, %c2_364, %c1_365, %c1_366] : memref<1x4x16x18xf32, #tpu.memory_space<vmem>>, vector<1x1x8x16xf32>
    %296 = vector.shape_cast %295 : vector<1x1x8x16xf32> to vector<8x16xf32>
    %cst_367 = arith.constant 6.250000e-01 : f32
    %297 = vector.broadcast %cst_367 : f32 to vector<8x16xf32>
    %298 = arith.mulf %296, %297 : vector<8x16xf32>
    %299 = arith.addf %294, %298 : vector<8x16xf32>
    %c0_368 = arith.constant 0 : index
    %c10 = arith.constant 10 : index
    %c0_369 = arith.constant 0 : index
    %c0_370 = arith.constant 0 : index
    %300 = vector.load %arg4[%c0_368, %c10, %c0_369, %c0_370] : memref<1x12x16x16xf32, #tpu.memory_space<vmem>>, vector<1x1x8x16xf32>
    %301 = vector.shape_cast %300 : vector<1x1x8x16xf32> to vector<8x16xf32>
    %302 = vector.shape_cast %299 : vector<8x16xf32> to vector<1x1x8x16xf32>
    tpu.vector_store %arg4[%c0_368, %c10, %c0_369, %c0_370], %302 {strides = array<i32>} : memref<1x12x16x16xf32, #tpu.memory_space<vmem>>, vector<1x1x8x16xf32>,
    %c0_371 = arith.constant 0 : index
    %c3_372 = arith.constant 3 : index
    %c0_373 = arith.constant 0 : index
    %c1_374 = arith.constant 1 : index
    %303 = vector.load %arg2[%c0_371, %c3_372, %c0_373, %c1_374] : memref<1x4x16x18xf32, #tpu.memory_space<vmem>>, vector<1x1x8x16xf32>
    %304 = vector.shape_cast %303 : vector<1x1x8x16xf32> to vector<8x16xf32>
    %c0_375 = arith.constant 0 : index
    %c3_376 = arith.constant 3 : index
    %c1_377 = arith.constant 1 : index
    %c0_378 = arith.constant 0 : index
    %305 = vector.load %arg2[%c0_375, %c3_376, %c1_377, %c0_378] : memref<1x4x16x18xf32, #tpu.memory_space<vmem>>, vector<1x1x8x16xf32>
    %306 = vector.shape_cast %305 : vector<1x1x8x16xf32> to vector<8x16xf32>
    %307 = arith.addf %304, %306 : vector<8x16xf32>
    %c0_379 = arith.constant 0 : index
    %c3_380 = arith.constant 3 : index
    %c1_381 = arith.constant 1 : index
    %c2_382 = arith.constant 2 : index
    %308 = vector.load %arg2[%c0_379, %c3_380, %c1_381, %c2_382] : memref<1x4x16x18xf32, #tpu.memory_space<vmem>>, vector<1x1x8x16xf32>
    %309 = vector.shape_cast %308 : vector<1x1x8x16xf32> to vector<8x16xf32>
    %310 = arith.addf %307, %309 : vector<8x16xf32>
    %c0_383 = arith.constant 0 : index
    %c3_384 = arith.constant 3 : index
    %c2_385 = arith.constant 2 : index
    %c1_386 = arith.constant 1 : index
    %311 = vector.load %arg2[%c0_383, %c3_384, %c2_385, %c1_386] : memref<1x4x16x18xf32, #tpu.memory_space<vmem>>, vector<1x1x8x16xf32>
    %312 = vector.shape_cast %311 : vector<1x1x8x16xf32> to vector<8x16xf32>
    %313 = arith.addf %310, %312 : vector<8x16xf32>
    %cst_387 = arith.constant -1.875000e-01 : f32
    %314 = vector.broadcast %cst_387 : f32 to vector<8x16xf32>
    %315 = arith.mulf %313, %314 : vector<8x16xf32>
    %c0_388 = arith.constant 0 : index
    %c0_389 = arith.constant 0 : index
    %c1_390 = arith.constant 1 : index
    %c1_391 = arith.constant 1 : index
    %316 = vector.load %arg2[%c0_388, %c0_389, %c1_390, %c1_391] : memref<1x4x16x18xf32, #tpu.memory_space<vmem>>, vector<1x1x8x16xf32>
    %317 = vector.shape_cast %316 : vector<1x1x8x16xf32> to vector<8x16xf32>
    %c0_392 = arith.constant 0 : index
    %c0_393 = arith.constant 0 : index
    %c1_394 = arith.constant 1 : index
    %c2_395 = arith.constant 2 : index
    %318 = vector.load %arg2[%c0_392, %c0_393, %c1_394, %c2_395] : memref<1x4x16x18xf32, #tpu.memory_space<vmem>>, vector<1x1x8x16xf32>
    %319 = vector.shape_cast %318 : vector<1x1x8x16xf32> to vector<8x16xf32>
    %320 = arith.addf %317, %319 : vector<8x16xf32>
    %c0_396 = arith.constant 0 : index
    %c0_397 = arith.constant 0 : index
    %c2_398 = arith.constant 2 : index
    %c1_399 = arith.constant 1 : index
    %321 = vector.load %arg2[%c0_396, %c0_397, %c2_398, %c1_399] : memref<1x4x16x18xf32, #tpu.memory_space<vmem>>, vector<1x1x8x16xf32>
    %322 = vector.shape_cast %321 : vector<1x1x8x16xf32> to vector<8x16xf32>
    %323 = arith.addf %320, %322 : vector<8x16xf32>
    %c0_400 = arith.constant 0 : index
    %c0_401 = arith.constant 0 : index
    %c2_402 = arith.constant 2 : index
    %c2_403 = arith.constant 2 : index
    %324 = vector.load %arg2[%c0_400, %c0_401, %c2_402, %c2_403] : memref<1x4x16x18xf32, #tpu.memory_space<vmem>>, vector<1x1x8x16xf32>
    %325 = vector.shape_cast %324 : vector<1x1x8x16xf32> to vector<8x16xf32>
    %326 = arith.addf %323, %325 : vector<8x16xf32>
    %cst_404 = arith.constant 2.500000e-01 : f32
    %327 = vector.broadcast %cst_404 : f32 to vector<8x16xf32>
    %328 = arith.mulf %326, %327 : vector<8x16xf32>
    %329 = arith.addf %315, %328 : vector<8x16xf32>
    %c0_405 = arith.constant 0 : index
    %c3_406 = arith.constant 3 : index
    %c1_407 = arith.constant 1 : index
    %c1_408 = arith.constant 1 : index
    %330 = vector.load %arg2[%c0_405, %c3_406, %c1_407, %c1_408] : memref<1x4x16x18xf32, #tpu.memory_space<vmem>>, vector<1x1x8x16xf32>
    %331 = vector.shape_cast %330 : vector<1x1x8x16xf32> to vector<8x16xf32>
    %cst_409 = arith.constant 7.500000e-01 : f32
    %332 = vector.broadcast %cst_409 : f32 to vector<8x16xf32>
    %333 = arith.mulf %331, %332 : vector<8x16xf32>
    %334 = arith.addf %329, %333 : vector<8x16xf32>
    %c0_410 = arith.constant 0 : index
    %c11 = arith.constant 11 : index
    %c0_411 = arith.constant 0 : index
    %c0_412 = arith.constant 0 : index
    %335 = vector.load %arg4[%c0_410, %c11, %c0_411, %c0_412] : memref<1x12x16x16xf32, #tpu.memory_space<vmem>>, vector<1x1x8x16xf32>
    %336 = vector.shape_cast %335 : vector<1x1x8x16xf32> to vector<8x16xf32>
    %337 = vector.shape_cast %334 : vector<8x16xf32> to vector<1x1x8x16xf32>
    tpu.vector_store %arg4[%c0_410, %c11, %c0_411, %c0_412], %337 {strides = array<i32>} : memref<1x12x16x16xf32, #tpu.memory_space<vmem>>, vector<1x1x8x16xf32>,
    %c0_413 = arith.constant 0 : index
    %c0_414 = arith.constant 0 : index
    %c1_415 = arith.constant 1 : index
    %338 = vector.load %arg5[%c0_413, %c0_414, %c1_415] : memref<4x16x18xf32, #tpu.memory_space<vmem>>, vector<1x8x16xf32>
    %339 = vector.shape_cast %338 : vector<1x8x16xf32> to vector<8x16xf32>
    %c0_416 = arith.constant 0 : index
    %c1_417 = arith.constant 1 : index
    %c0_418 = arith.constant 0 : index
    %340 = vector.load %arg5[%c0_416, %c1_417, %c0_418] : memref<4x16x18xf32, #tpu.memory_space<vmem>>, vector<1x8x16xf32>
    %341 = vector.shape_cast %340 : vector<1x8x16xf32> to vector<8x16xf32>
    %342 = arith.addf %339, %341 : vector<8x16xf32>
    %c0_419 = arith.constant 0 : index
    %c1_420 = arith.constant 1 : index
    %c2_421 = arith.constant 2 : index
    %343 = vector.load %arg5[%c0_419, %c1_420, %c2_421] : memref<4x16x18xf32, #tpu.memory_space<vmem>>, vector<1x8x16xf32>
    %344 = vector.shape_cast %343 : vector<1x8x16xf32> to vector<8x16xf32>
    %345 = arith.addf %342, %344 : vector<8x16xf32>
    %c0_422 = arith.constant 0 : index
    %c2_423 = arith.constant 2 : index
    %c1_424 = arith.constant 1 : index
    %346 = vector.load %arg5[%c0_422, %c2_423, %c1_424] : memref<4x16x18xf32, #tpu.memory_space<vmem>>, vector<1x8x16xf32>
    %347 = vector.shape_cast %346 : vector<1x8x16xf32> to vector<8x16xf32>
    %348 = arith.addf %345, %347 : vector<8x16xf32>
    %cst_425 = arith.constant -1.875000e-01 : f32
    %349 = vector.broadcast %cst_425 : f32 to vector<8x16xf32>
    %350 = arith.mulf %348, %349 : vector<8x16xf32>
    %c3_426 = arith.constant 3 : index
    %c0_427 = arith.constant 0 : index
    %c0_428 = arith.constant 0 : index
    %351 = vector.load %arg5[%c3_426, %c0_427, %c0_428] : memref<4x16x18xf32, #tpu.memory_space<vmem>>, vector<1x8x16xf32>
    %352 = vector.shape_cast %351 : vector<1x8x16xf32> to vector<8x16xf32>
    %c3_429 = arith.constant 3 : index
    %c0_430 = arith.constant 0 : index
    %c1_431 = arith.constant 1 : index
    %353 = vector.load %arg5[%c3_429, %c0_430, %c1_431] : memref<4x16x18xf32, #tpu.memory_space<vmem>>, vector<1x8x16xf32>
    %354 = vector.shape_cast %353 : vector<1x8x16xf32> to vector<8x16xf32>
    %355 = arith.addf %352, %354 : vector<8x16xf32>
    %c3_432 = arith.constant 3 : index
    %c1_433 = arith.constant 1 : index
    %c0_434 = arith.constant 0 : index
    %356 = vector.load %arg5[%c3_432, %c1_433, %c0_434] : memref<4x16x18xf32, #tpu.memory_space<vmem>>, vector<1x8x16xf32>
    %357 = vector.shape_cast %356 : vector<1x8x16xf32> to vector<8x16xf32>
    %358 = arith.addf %355, %357 : vector<8x16xf32>
    %c3_435 = arith.constant 3 : index
    %c1_436 = arith.constant 1 : index
    %c1_437 = arith.constant 1 : index
    %359 = vector.load %arg5[%c3_435, %c1_436, %c1_437] : memref<4x16x18xf32, #tpu.memory_space<vmem>>, vector<1x8x16xf32>
    %360 = vector.shape_cast %359 : vector<1x8x16xf32> to vector<8x16xf32>
    %361 = arith.addf %358, %360 : vector<8x16xf32>
    %cst_438 = arith.constant 2.500000e-01 : f32
    %362 = vector.broadcast %cst_438 : f32 to vector<8x16xf32>
    %363 = arith.mulf %361, %362 : vector<8x16xf32>
    %364 = arith.addf %350, %363 : vector<8x16xf32>
    %c0_439 = arith.constant 0 : index
    %c1_440 = arith.constant 1 : index
    %c1_441 = arith.constant 1 : index
    %365 = vector.load %arg5[%c0_439, %c1_440, %c1_441] : memref<4x16x18xf32, #tpu.memory_space<vmem>>, vector<1x8x16xf32>
    %366 = vector.shape_cast %365 : vector<1x8x16xf32> to vector<8x16xf32>
    %cst_442 = arith.constant 7.500000e-01 : f32
    %367 = vector.broadcast %cst_442 : f32 to vector<8x16xf32>
    %368 = arith.mulf %366, %367 : vector<8x16xf32>
    %369 = arith.addf %364, %368 : vector<8x16xf32>
    %c0_443 = arith.constant 0 : index
    %c0_444 = arith.constant 0 : index
    %c8_445 = arith.constant 8 : index
    %c0_446 = arith.constant 0 : index
    %370 = vector.load %arg4[%c0_443, %c0_444, %c8_445, %c0_446] : memref<1x12x16x16xf32, #tpu.memory_space<vmem>>, vector<1x1x8x16xf32>
    %371 = vector.shape_cast %370 : vector<1x1x8x16xf32> to vector<8x16xf32>
    %372 = vector.shape_cast %369 : vector<8x16xf32> to vector<1x1x8x16xf32>
    tpu.vector_store %arg4[%c0_443, %c0_444, %c8_445, %c0_446], %372 {strides = array<i32>} : memref<1x12x16x16xf32, #tpu.memory_space<vmem>>, vector<1x1x8x16xf32>,
    %c1_447 = arith.constant 1 : index
    %c0_448 = arith.constant 0 : index
    %c1_449 = arith.constant 1 : index
    %373 = vector.load %arg5[%c1_447, %c0_448, %c1_449] : memref<4x16x18xf32, #tpu.memory_space<vmem>>, vector<1x8x16xf32>
    %374 = vector.shape_cast %373 : vector<1x8x16xf32> to vector<8x16xf32>
    %c2_450 = arith.constant 2 : index
    %c0_451 = arith.constant 0 : index
    %c1_452 = arith.constant 1 : index
    %375 = vector.load %arg5[%c2_450, %c0_451, %c1_452] : memref<4x16x18xf32, #tpu.memory_space<vmem>>, vector<1x8x16xf32>
    %376 = vector.shape_cast %375 : vector<1x8x16xf32> to vector<8x16xf32>
    %377 = arith.addf %374, %376 : vector<8x16xf32>
    %c2_453 = arith.constant 2 : index
    %c0_454 = arith.constant 0 : index
    %c2_455 = arith.constant 2 : index
    %378 = vector.load %arg5[%c2_453, %c0_454, %c2_455] : memref<4x16x18xf32, #tpu.memory_space<vmem>>, vector<1x8x16xf32>
    %379 = vector.shape_cast %378 : vector<1x8x16xf32> to vector<8x16xf32>
    %380 = arith.addf %377, %379 : vector<8x16xf32>
    %c2_456 = arith.constant 2 : index
    %c1_457 = arith.constant 1 : index
    %c1_458 = arith.constant 1 : index
    %381 = vector.load %arg5[%c2_456, %c1_457, %c1_458] : memref<4x16x18xf32, #tpu.memory_space<vmem>>, vector<1x8x16xf32>
    %382 = vector.shape_cast %381 : vector<1x8x16xf32> to vector<8x16xf32>
    %383 = arith.addf %380, %382 : vector<8x16xf32>
    %c2_459 = arith.constant 2 : index
    %c1_460 = arith.constant 1 : index
    %c2_461 = arith.constant 2 : index
    %384 = vector.load %arg5[%c2_459, %c1_460, %c2_461] : memref<4x16x18xf32, #tpu.memory_space<vmem>>, vector<1x8x16xf32>
    %385 = vector.shape_cast %384 : vector<1x8x16xf32> to vector<8x16xf32>
    %386 = arith.addf %383, %385 : vector<8x16xf32>
    %c1_462 = arith.constant 1 : index
    %c2_463 = arith.constant 2 : index
    %c1_464 = arith.constant 1 : index
    %387 = vector.load %arg5[%c1_462, %c2_463, %c1_464] : memref<4x16x18xf32, #tpu.memory_space<vmem>>, vector<1x8x16xf32>
    %388 = vector.shape_cast %387 : vector<1x8x16xf32> to vector<8x16xf32>
    %389 = arith.addf %386, %388 : vector<8x16xf32>
    %cst_465 = arith.constant -1.250000e-01 : f32
    %390 = vector.broadcast %cst_465 : f32 to vector<8x16xf32>
    %391 = arith.mulf %389, %390 : vector<8x16xf32>
    %c1_466 = arith.constant 1 : index
    %c1_467 = arith.constant 1 : index
    %c0_468 = arith.constant 0 : index
    %392 = vector.load %arg5[%c1_466, %c1_467, %c0_468] : memref<4x16x18xf32, #tpu.memory_space<vmem>>, vector<1x8x16xf32>
    %393 = vector.shape_cast %392 : vector<1x8x16xf32> to vector<8x16xf32>
    %c1_469 = arith.constant 1 : index
    %c1_470 = arith.constant 1 : index
    %c2_471 = arith.constant 2 : index
    %394 = vector.load %arg5[%c1_469, %c1_470, %c2_471] : memref<4x16x18xf32, #tpu.memory_space<vmem>>, vector<1x8x16xf32>
    %395 = vector.shape_cast %394 : vector<1x8x16xf32> to vector<8x16xf32>
    %396 = arith.addf %393, %395 : vector<8x16xf32>
    %cst_472 = arith.constant 6.250000e-02 : f32
    %397 = vector.broadcast %cst_472 : f32 to vector<8x16xf32>
    %398 = arith.mulf %396, %397 : vector<8x16xf32>
    %399 = arith.addf %391, %398 : vector<8x16xf32>
    %c3_473 = arith.constant 3 : index
    %c0_474 = arith.constant 0 : index
    %c1_475 = arith.constant 1 : index
    %400 = vector.load %arg5[%c3_473, %c0_474, %c1_475] : memref<4x16x18xf32, #tpu.memory_space<vmem>>, vector<1x8x16xf32>
    %401 = vector.shape_cast %400 : vector<1x8x16xf32> to vector<8x16xf32>
    %c3_476 = arith.constant 3 : index
    %c1_477 = arith.constant 1 : index
    %c1_478 = arith.constant 1 : index
    %402 = vector.load %arg5[%c3_476, %c1_477, %c1_478] : memref<4x16x18xf32, #tpu.memory_space<vmem>>, vector<1x8x16xf32>
    %403 = vector.shape_cast %402 : vector<1x8x16xf32> to vector<8x16xf32>
    %404 = arith.addf %401, %403 : vector<8x16xf32>
    %cst_479 = arith.constant 5.000000e-01 : f32
    %405 = vector.broadcast %cst_479 : f32 to vector<8x16xf32>
    %406 = arith.mulf %404, %405 : vector<8x16xf32>
    %407 = arith.addf %399, %406 : vector<8x16xf32>
    %c1_480 = arith.constant 1 : index
    %c1_481 = arith.constant 1 : index
    %c1_482 = arith.constant 1 : index
    %408 = vector.load %arg5[%c1_480, %c1_481, %c1_482] : memref<4x16x18xf32, #tpu.memory_space<vmem>>, vector<1x8x16xf32>
    %409 = vector.shape_cast %408 : vector<1x8x16xf32> to vector<8x16xf32>
    %cst_483 = arith.constant 6.250000e-01 : f32
    %410 = vector.broadcast %cst_483 : f32 to vector<8x16xf32>
    %411 = arith.mulf %409, %410 : vector<8x16xf32>
    %412 = arith.addf %407, %411 : vector<8x16xf32>
    %c0_484 = arith.constant 0 : index
    %c1_485 = arith.constant 1 : index
    %c8_486 = arith.constant 8 : index
    %c0_487 = arith.constant 0 : index
    %413 = vector.load %arg4[%c0_484, %c1_485, %c8_486, %c0_487] : memref<1x12x16x16xf32, #tpu.memory_space<vmem>>, vector<1x1x8x16xf32>
    %414 = vector.shape_cast %413 : vector<1x1x8x16xf32> to vector<8x16xf32>
    %415 = vector.shape_cast %412 : vector<8x16xf32> to vector<1x1x8x16xf32>
    tpu.vector_store %arg4[%c0_484, %c1_485, %c8_486, %c0_487], %415 {strides = array<i32>} : memref<1x12x16x16xf32, #tpu.memory_space<vmem>>, vector<1x1x8x16xf32>,
    %c1_488 = arith.constant 1 : index
    %c1_489 = arith.constant 1 : index
    %c0_490 = arith.constant 0 : index
    %416 = vector.load %arg5[%c1_488, %c1_489, %c0_490] : memref<4x16x18xf32, #tpu.memory_space<vmem>>, vector<1x8x16xf32>
    %417 = vector.shape_cast %416 : vector<1x8x16xf32> to vector<8x16xf32>
    %c1_491 = arith.constant 1 : index
    %c1_492 = arith.constant 1 : index
    %c1_493 = arith.constant 1 : index
    %418 = vector.load %arg5[%c1_491, %c1_492, %c1_493] : memref<4x16x18xf32, #tpu.memory_space<vmem>>, vector<1x8x16xf32>
    %419 = vector.shape_cast %418 : vector<1x8x16xf32> to vector<8x16xf32>
    %420 = arith.addf %417, %419 : vector<8x16xf32>
    %c2_494 = arith.constant 2 : index
    %c1_495 = arith.constant 1 : index
    %c0_496 = arith.constant 0 : index
    %421 = vector.load %arg5[%c2_494, %c1_495, %c0_496] : memref<4x16x18xf32, #tpu.memory_space<vmem>>, vector<1x8x16xf32>
    %422 = vector.shape_cast %421 : vector<1x8x16xf32> to vector<8x16xf32>
    %423 = arith.addf %420, %422 : vector<8x16xf32>
    %c2_497 = arith.constant 2 : index
    %c1_498 = arith.constant 1 : index
    %c2_499 = arith.constant 2 : index
    %424 = vector.load %arg5[%c2_497, %c1_498, %c2_499] : memref<4x16x18xf32, #tpu.memory_space<vmem>>, vector<1x8x16xf32>
    %425 = vector.shape_cast %424 : vector<1x8x16xf32> to vector<8x16xf32>
    %426 = arith.addf %423, %425 : vector<8x16xf32>
    %c1_500 = arith.constant 1 : index
    %c2_501 = arith.constant 2 : index
    %c0_502 = arith.constant 0 : index
    %427 = vector.load %arg5[%c1_500, %c2_501, %c0_502] : memref<4x16x18xf32, #tpu.memory_space<vmem>>, vector<1x8x16xf32>
    %428 = vector.shape_cast %427 : vector<1x8x16xf32> to vector<8x16xf32>
    %429 = arith.addf %426, %428 : vector<8x16xf32>
    %c1_503 = arith.constant 1 : index
    %c2_504 = arith.constant 2 : index
    %c1_505 = arith.constant 1 : index
    %430 = vector.load %arg5[%c1_503, %c2_504, %c1_505] : memref<4x16x18xf32, #tpu.memory_space<vmem>>, vector<1x8x16xf32>
    %431 = vector.shape_cast %430 : vector<1x8x16xf32> to vector<8x16xf32>
    %432 = arith.addf %429, %431 : vector<8x16xf32>
    %cst_506 = arith.constant -1.250000e-01 : f32
    %433 = vector.broadcast %cst_506 : f32 to vector<8x16xf32>
    %434 = arith.mulf %432, %433 : vector<8x16xf32>
    %c2_507 = arith.constant 2 : index
    %c0_508 = arith.constant 0 : index
    %c1_509 = arith.constant 1 : index
    %435 = vector.load %arg5[%c2_507, %c0_508, %c1_509] : memref<4x16x18xf32, #tpu.memory_space<vmem>>, vector<1x8x16xf32>
    %436 = vector.shape_cast %435 : vector<1x8x16xf32> to vector<8x16xf32>
    %c2_510 = arith.constant 2 : index
    %c2_511 = arith.constant 2 : index
    %c1_512 = arith.constant 1 : index
    %437 = vector.load %arg5[%c2_510, %c2_511, %c1_512] : memref<4x16x18xf32, #tpu.memory_space<vmem>>, vector<1x8x16xf32>
    %438 = vector.shape_cast %437 : vector<1x8x16xf32> to vector<8x16xf32>
    %439 = arith.addf %436, %438 : vector<8x16xf32>
    %cst_513 = arith.constant 6.250000e-02 : f32
    %440 = vector.broadcast %cst_513 : f32 to vector<8x16xf32>
    %441 = arith.mulf %439, %440 : vector<8x16xf32>
    %442 = arith.addf %434, %441 : vector<8x16xf32>
    %c3_514 = arith.constant 3 : index
    %c1_515 = arith.constant 1 : index
    %c0_516 = arith.constant 0 : index
    %443 = vector.load %arg5[%c3_514, %c1_515, %c0_516] : memref<4x16x18xf32, #tpu.memory_space<vmem>>, vector<1x8x16xf32>
    %444 = vector.shape_cast %443 : vector<1x8x16xf32> to vector<8x16xf32>
    %c3_517 = arith.constant 3 : index
    %c1_518 = arith.constant 1 : index
    %c1_519 = arith.constant 1 : index
    %445 = vector.load %arg5[%c3_517, %c1_518, %c1_519] : memref<4x16x18xf32, #tpu.memory_space<vmem>>, vector<1x8x16xf32>
    %446 = vector.shape_cast %445 : vector<1x8x16xf32> to vector<8x16xf32>
    %447 = arith.addf %444, %446 : vector<8x16xf32>
    %cst_520 = arith.constant 5.000000e-01 : f32
    %448 = vector.broadcast %cst_520 : f32 to vector<8x16xf32>
    %449 = arith.mulf %447, %448 : vector<8x16xf32>
    %450 = arith.addf %442, %449 : vector<8x16xf32>
    %c2_521 = arith.constant 2 : index
    %c1_522 = arith.constant 1 : index
    %c1_523 = arith.constant 1 : index
    %451 = vector.load %arg5[%c2_521, %c1_522, %c1_523] : memref<4x16x18xf32, #tpu.memory_space<vmem>>, vector<1x8x16xf32>
    %452 = vector.shape_cast %451 : vector<1x8x16xf32> to vector<8x16xf32>
    %cst_524 = arith.constant 6.250000e-01 : f32
    %453 = vector.broadcast %cst_524 : f32 to vector<8x16xf32>
    %454 = arith.mulf %452, %453 : vector<8x16xf32>
    %455 = arith.addf %450, %454 : vector<8x16xf32>
    %c0_525 = arith.constant 0 : index
    %c2_526 = arith.constant 2 : index
    %c8_527 = arith.constant 8 : index
    %c0_528 = arith.constant 0 : index
    %456 = vector.load %arg4[%c0_525, %c2_526, %c8_527, %c0_528] : memref<1x12x16x16xf32, #tpu.memory_space<vmem>>, vector<1x1x8x16xf32>
    %457 = vector.shape_cast %456 : vector<1x1x8x16xf32> to vector<8x16xf32>
    %458 = vector.shape_cast %455 : vector<8x16xf32> to vector<1x1x8x16xf32>
    tpu.vector_store %arg4[%c0_525, %c2_526, %c8_527, %c0_528], %458 {strides = array<i32>} : memref<1x12x16x16xf32, #tpu.memory_space<vmem>>, vector<1x1x8x16xf32>,
    %c2_529 = arith.constant 2 : index
    %c1_530 = arith.constant 1 : index
    %c1_531 = arith.constant 1 : index
    %459 = vector.load %arg5[%c2_529, %c1_530, %c1_531] : memref<4x16x18xf32, #tpu.memory_space<vmem>>, vector<1x8x16xf32>
    %460 = vector.shape_cast %459 : vector<1x8x16xf32> to vector<8x16xf32>
    %c0_532 = arith.constant 0 : index
    %c3_533 = arith.constant 3 : index
    %c8_534 = arith.constant 8 : index
    %c0_535 = arith.constant 0 : index
    %461 = vector.load %arg4[%c0_532, %c3_533, %c8_534, %c0_535] : memref<1x12x16x16xf32, #tpu.memory_space<vmem>>, vector<1x1x8x16xf32>
    %462 = vector.shape_cast %461 : vector<1x1x8x16xf32> to vector<8x16xf32>
    %463 = vector.shape_cast %460 : vector<8x16xf32> to vector<1x1x8x16xf32>
    tpu.vector_store %arg4[%c0_532, %c3_533, %c8_534, %c0_535], %463 {strides = array<i32>} : memref<1x12x16x16xf32, #tpu.memory_space<vmem>>, vector<1x1x8x16xf32>,
    %c0_536 = arith.constant 0 : index
    %c0_537 = arith.constant 0 : index
    %c1_538 = arith.constant 1 : index
    %464 = vector.load %arg5[%c0_536, %c0_537, %c1_538] : memref<4x16x18xf32, #tpu.memory_space<vmem>>, vector<1x8x16xf32>
    %465 = vector.shape_cast %464 : vector<1x8x16xf32> to vector<8x16xf32>
    %c0_539 = arith.constant 0 : index
    %c1_540 = arith.constant 1 : index
    %c0_541 = arith.constant 0 : index
    %466 = vector.load %arg5[%c0_539, %c1_540, %c0_541] : memref<4x16x18xf32, #tpu.memory_space<vmem>>, vector<1x8x16xf32>
    %467 = vector.shape_cast %466 : vector<1x8x16xf32> to vector<8x16xf32>
    %468 = arith.addf %465, %467 : vector<8x16xf32>
    %c0_542 = arith.constant 0 : index
    %c1_543 = arith.constant 1 : index
    %c2_544 = arith.constant 2 : index
    %469 = vector.load %arg5[%c0_542, %c1_543, %c2_544] : memref<4x16x18xf32, #tpu.memory_space<vmem>>, vector<1x8x16xf32>
    %470 = vector.shape_cast %469 : vector<1x8x16xf32> to vector<8x16xf32>
    %471 = arith.addf %468, %470 : vector<8x16xf32>
    %c0_545 = arith.constant 0 : index
    %c2_546 = arith.constant 2 : index
    %c1_547 = arith.constant 1 : index
    %472 = vector.load %arg5[%c0_545, %c2_546, %c1_547] : memref<4x16x18xf32, #tpu.memory_space<vmem>>, vector<1x8x16xf32>
    %473 = vector.shape_cast %472 : vector<1x8x16xf32> to vector<8x16xf32>
    %474 = arith.addf %471, %473 : vector<8x16xf32>
    %cst_548 = arith.constant -1.250000e-01 : f32
    %475 = vector.broadcast %cst_548 : f32 to vector<8x16xf32>
    %476 = arith.mulf %474, %475 : vector<8x16xf32>
    %c2_549 = arith.constant 2 : index
    %c0_550 = arith.constant 0 : index
    %c1_551 = arith.constant 1 : index
    %477 = vector.load %arg5[%c2_549, %c0_550, %c1_551] : memref<4x16x18xf32, #tpu.memory_space<vmem>>, vector<1x8x16xf32>
    %478 = vector.shape_cast %477 : vector<1x8x16xf32> to vector<8x16xf32>
    %c1_552 = arith.constant 1 : index
    %c1_553 = arith.constant 1 : index
    %c0_554 = arith.constant 0 : index
    %479 = vector.load %arg5[%c1_552, %c1_553, %c0_554] : memref<4x16x18xf32, #tpu.memory_space<vmem>>, vector<1x8x16xf32>
    %480 = vector.shape_cast %479 : vector<1x8x16xf32> to vector<8x16xf32>
    %481 = arith.addf %478, %480 : vector<8x16xf32>
    %c1_555 = arith.constant 1 : index
    %c1_556 = arith.constant 1 : index
    %c1_557 = arith.constant 1 : index
    %482 = vector.load %arg5[%c1_555, %c1_556, %c1_557] : memref<4x16x18xf32, #tpu.memory_space<vmem>>, vector<1x8x16xf32>
    %483 = vector.shape_cast %482 : vector<1x8x16xf32> to vector<8x16xf32>
    %484 = arith.addf %481, %483 : vector<8x16xf32>
    %c2_558 = arith.constant 2 : index
    %c1_559 = arith.constant 1 : index
    %c1_560 = arith.constant 1 : index
    %485 = vector.load %arg5[%c2_558, %c1_559, %c1_560] : memref<4x16x18xf32, #tpu.memory_space<vmem>>, vector<1x8x16xf32>
    %486 = vector.shape_cast %485 : vector<1x8x16xf32> to vector<8x16xf32>
    %487 = arith.addf %484, %486 : vector<8x16xf32>
    %cst_561 = arith.constant 2.500000e-01 : f32
    %488 = vector.broadcast %cst_561 : f32 to vector<8x16xf32>
    %489 = arith.mulf %487, %488 : vector<8x16xf32>
    %490 = arith.addf %476, %489 : vector<8x16xf32>
    %c0_562 = arith.constant 0 : index
    %c1_563 = arith.constant 1 : index
    %c1_564 = arith.constant 1 : index
    %491 = vector.load %arg5[%c0_562, %c1_563, %c1_564] : memref<4x16x18xf32, #tpu.memory_space<vmem>>, vector<1x8x16xf32>
    %492 = vector.shape_cast %491 : vector<1x8x16xf32> to vector<8x16xf32>
    %cst_565 = arith.constant 5.000000e-01 : f32
    %493 = vector.broadcast %cst_565 : f32 to vector<8x16xf32>
    %494 = arith.mulf %492, %493 : vector<8x16xf32>
    %495 = arith.addf %490, %494 : vector<8x16xf32>
    %c0_566 = arith.constant 0 : index
    %c4_567 = arith.constant 4 : index
    %c8_568 = arith.constant 8 : index
    %c0_569 = arith.constant 0 : index
    %496 = vector.load %arg4[%c0_566, %c4_567, %c8_568, %c0_569] : memref<1x12x16x16xf32, #tpu.memory_space<vmem>>, vector<1x1x8x16xf32>
    %497 = vector.shape_cast %496 : vector<1x1x8x16xf32> to vector<8x16xf32>
    %498 = vector.shape_cast %495 : vector<8x16xf32> to vector<1x1x8x16xf32>
    tpu.vector_store %arg4[%c0_566, %c4_567, %c8_568, %c0_569], %498 {strides = array<i32>} : memref<1x12x16x16xf32, #tpu.memory_space<vmem>>, vector<1x1x8x16xf32>,
    %c0_570 = arith.constant 0 : index
    %c1_571 = arith.constant 1 : index
    %c1_572 = arith.constant 1 : index
    %499 = vector.load %arg5[%c0_570, %c1_571, %c1_572] : memref<4x16x18xf32, #tpu.memory_space<vmem>>, vector<1x8x16xf32>
    %500 = vector.shape_cast %499 : vector<1x8x16xf32> to vector<8x16xf32>
    %c0_573 = arith.constant 0 : index
    %c5_574 = arith.constant 5 : index
    %c8_575 = arith.constant 8 : index
    %c0_576 = arith.constant 0 : index
    %501 = vector.load %arg4[%c0_573, %c5_574, %c8_575, %c0_576] : memref<1x12x16x16xf32, #tpu.memory_space<vmem>>, vector<1x1x8x16xf32>
    %502 = vector.shape_cast %501 : vector<1x1x8x16xf32> to vector<8x16xf32>
    %503 = vector.shape_cast %500 : vector<8x16xf32> to vector<1x1x8x16xf32>
    tpu.vector_store %arg4[%c0_573, %c5_574, %c8_575, %c0_576], %503 {strides = array<i32>} : memref<1x12x16x16xf32, #tpu.memory_space<vmem>>, vector<1x1x8x16xf32>,
    %c3_577 = arith.constant 3 : index
    %c1_578 = arith.constant 1 : index
    %c1_579 = arith.constant 1 : index
    %504 = vector.load %arg5[%c3_577, %c1_578, %c1_579] : memref<4x16x18xf32, #tpu.memory_space<vmem>>, vector<1x8x16xf32>
    %505 = vector.shape_cast %504 : vector<1x8x16xf32> to vector<8x16xf32>
    %c0_580 = arith.constant 0 : index
    %c6_581 = arith.constant 6 : index
    %c8_582 = arith.constant 8 : index
    %c0_583 = arith.constant 0 : index
    %506 = vector.load %arg4[%c0_580, %c6_581, %c8_582, %c0_583] : memref<1x12x16x16xf32, #tpu.memory_space<vmem>>, vector<1x1x8x16xf32>
    %507 = vector.shape_cast %506 : vector<1x1x8x16xf32> to vector<8x16xf32>
    %508 = vector.shape_cast %505 : vector<8x16xf32> to vector<1x1x8x16xf32>
    tpu.vector_store %arg4[%c0_580, %c6_581, %c8_582, %c0_583], %508 {strides = array<i32>} : memref<1x12x16x16xf32, #tpu.memory_space<vmem>>, vector<1x1x8x16xf32>,
    %c3_584 = arith.constant 3 : index
    %c0_585 = arith.constant 0 : index
    %c1_586 = arith.constant 1 : index
    %509 = vector.load %arg5[%c3_584, %c0_585, %c1_586] : memref<4x16x18xf32, #tpu.memory_space<vmem>>, vector<1x8x16xf32>
    %510 = vector.shape_cast %509 : vector<1x8x16xf32> to vector<8x16xf32>
    %c3_587 = arith.constant 3 : index
    %c1_588 = arith.constant 1 : index
    %c0_589 = arith.constant 0 : index
    %511 = vector.load %arg5[%c3_587, %c1_588, %c0_589] : memref<4x16x18xf32, #tpu.memory_space<vmem>>, vector<1x8x16xf32>
    %512 = vector.shape_cast %511 : vector<1x8x16xf32> to vector<8x16xf32>
    %513 = arith.addf %510, %512 : vector<8x16xf32>
    %c3_590 = arith.constant 3 : index
    %c1_591 = arith.constant 1 : index
    %c2_592 = arith.constant 2 : index
    %514 = vector.load %arg5[%c3_590, %c1_591, %c2_592] : memref<4x16x18xf32, #tpu.memory_space<vmem>>, vector<1x8x16xf32>
    %515 = vector.shape_cast %514 : vector<1x8x16xf32> to vector<8x16xf32>
    %516 = arith.addf %513, %515 : vector<8x16xf32>
    %c3_593 = arith.constant 3 : index
    %c2_594 = arith.constant 2 : index
    %c1_595 = arith.constant 1 : index
    %517 = vector.load %arg5[%c3_593, %c2_594, %c1_595] : memref<4x16x18xf32, #tpu.memory_space<vmem>>, vector<1x8x16xf32>
    %518 = vector.shape_cast %517 : vector<1x8x16xf32> to vector<8x16xf32>
    %519 = arith.addf %516, %518 : vector<8x16xf32>
    %cst_596 = arith.constant -1.250000e-01 : f32
    %520 = vector.broadcast %cst_596 : f32 to vector<8x16xf32>
    %521 = arith.mulf %519, %520 : vector<8x16xf32>
    %c1_597 = arith.constant 1 : index
    %c1_598 = arith.constant 1 : index
    %c1_599 = arith.constant 1 : index
    %522 = vector.load %arg5[%c1_597, %c1_598, %c1_599] : memref<4x16x18xf32, #tpu.memory_space<vmem>>, vector<1x8x16xf32>
    %523 = vector.shape_cast %522 : vector<1x8x16xf32> to vector<8x16xf32>
    %c2_600 = arith.constant 2 : index
    %c1_601 = arith.constant 1 : index
    %c1_602 = arith.constant 1 : index
    %524 = vector.load %arg5[%c2_600, %c1_601, %c1_602] : memref<4x16x18xf32, #tpu.memory_space<vmem>>, vector<1x8x16xf32>
    %525 = vector.shape_cast %524 : vector<1x8x16xf32> to vector<8x16xf32>
    %526 = arith.addf %523, %525 : vector<8x16xf32>
    %c2_603 = arith.constant 2 : index
    %c1_604 = arith.constant 1 : index
    %c2_605 = arith.constant 2 : index
    %527 = vector.load %arg5[%c2_603, %c1_604, %c2_605] : memref<4x16x18xf32, #tpu.memory_space<vmem>>, vector<1x8x16xf32>
    %528 = vector.shape_cast %527 : vector<1x8x16xf32> to vector<8x16xf32>
    %529 = arith.addf %526, %528 : vector<8x16xf32>
    %c1_606 = arith.constant 1 : index
    %c2_607 = arith.constant 2 : index
    %c1_608 = arith.constant 1 : index
    %530 = vector.load %arg5[%c1_606, %c2_607, %c1_608] : memref<4x16x18xf32, #tpu.memory_space<vmem>>, vector<1x8x16xf32>
    %531 = vector.shape_cast %530 : vector<1x8x16xf32> to vector<8x16xf32>
    %532 = arith.addf %529, %531 : vector<8x16xf32>
    %cst_609 = arith.constant 2.500000e-01 : f32
    %533 = vector.broadcast %cst_609 : f32 to vector<8x16xf32>
    %534 = arith.mulf %532, %533 : vector<8x16xf32>
    %535 = arith.addf %521, %534 : vector<8x16xf32>
    %c3_610 = arith.constant 3 : index
    %c1_611 = arith.constant 1 : index
    %c1_612 = arith.constant 1 : index
    %536 = vector.load %arg5[%c3_610, %c1_611, %c1_612] : memref<4x16x18xf32, #tpu.memory_space<vmem>>, vector<1x8x16xf32>
    %537 = vector.shape_cast %536 : vector<1x8x16xf32> to vector<8x16xf32>
    %cst_613 = arith.constant 5.000000e-01 : f32
    %538 = vector.broadcast %cst_613 : f32 to vector<8x16xf32>
    %539 = arith.mulf %537, %538 : vector<8x16xf32>
    %540 = arith.addf %535, %539 : vector<8x16xf32>
    %c0_614 = arith.constant 0 : index
    %c7_615 = arith.constant 7 : index
    %c8_616 = arith.constant 8 : index
    %c0_617 = arith.constant 0 : index
    %541 = vector.load %arg4[%c0_614, %c7_615, %c8_616, %c0_617] : memref<1x12x16x16xf32, #tpu.memory_space<vmem>>, vector<1x1x8x16xf32>
    %542 = vector.shape_cast %541 : vector<1x1x8x16xf32> to vector<8x16xf32>
    %543 = vector.shape_cast %540 : vector<8x16xf32> to vector<1x1x8x16xf32>
    tpu.vector_store %arg4[%c0_614, %c7_615, %c8_616, %c0_617], %543 {strides = array<i32>} : memref<1x12x16x16xf32, #tpu.memory_space<vmem>>, vector<1x1x8x16xf32>,
    %c1_618 = arith.constant 1 : index
    %c1_619 = arith.constant 1 : index
    %c1_620 = arith.constant 1 : index
    %544 = vector.load %arg5[%c1_618, %c1_619, %c1_620] : memref<4x16x18xf32, #tpu.memory_space<vmem>>, vector<1x8x16xf32>
    %545 = vector.shape_cast %544 : vector<1x8x16xf32> to vector<8x16xf32>
    %c0_621 = arith.constant 0 : index
    %c8_622 = arith.constant 8 : index
    %c8_623 = arith.constant 8 : index
    %c0_624 = arith.constant 0 : index
    %546 = vector.load %arg4[%c0_621, %c8_622, %c8_623, %c0_624] : memref<1x12x16x16xf32, #tpu.memory_space<vmem>>, vector<1x1x8x16xf32>
    %547 = vector.shape_cast %546 : vector<1x1x8x16xf32> to vector<8x16xf32>
    %548 = vector.shape_cast %545 : vector<8x16xf32> to vector<1x1x8x16xf32>
    tpu.vector_store %arg4[%c0_621, %c8_622, %c8_623, %c0_624], %548 {strides = array<i32>} : memref<1x12x16x16xf32, #tpu.memory_space<vmem>>, vector<1x1x8x16xf32>,
    %c2_625 = arith.constant 2 : index
    %c0_626 = arith.constant 0 : index
    %c1_627 = arith.constant 1 : index
    %549 = vector.load %arg5[%c2_625, %c0_626, %c1_627] : memref<4x16x18xf32, #tpu.memory_space<vmem>>, vector<1x8x16xf32>
    %550 = vector.shape_cast %549 : vector<1x8x16xf32> to vector<8x16xf32>
    %c2_628 = arith.constant 2 : index
    %c0_629 = arith.constant 0 : index
    %c2_630 = arith.constant 2 : index
    %551 = vector.load %arg5[%c2_628, %c0_629, %c2_630] : memref<4x16x18xf32, #tpu.memory_space<vmem>>, vector<1x8x16xf32>
    %552 = vector.shape_cast %551 : vector<1x8x16xf32> to vector<8x16xf32>
    %553 = arith.addf %550, %552 : vector<8x16xf32>
    %c1_631 = arith.constant 1 : index
    %c1_632 = arith.constant 1 : index
    %c0_633 = arith.constant 0 : index
    %554 = vector.load %arg5[%c1_631, %c1_632, %c0_633] : memref<4x16x18xf32, #tpu.memory_space<vmem>>, vector<1x8x16xf32>
    %555 = vector.shape_cast %554 : vector<1x8x16xf32> to vector<8x16xf32>
    %556 = arith.addf %553, %555 : vector<8x16xf32>
    %c1_634 = arith.constant 1 : index
    %c1_635 = arith.constant 1 : index
    %c2_636 = arith.constant 2 : index
    %557 = vector.load %arg5[%c1_634, %c1_635, %c2_636] : memref<4x16x18xf32, #tpu.memory_space<vmem>>, vector<1x8x16xf32>
    %558 = vector.shape_cast %557 : vector<1x8x16xf32> to vector<8x16xf32>
    %559 = arith.addf %556, %558 : vector<8x16xf32>
    %c2_637 = arith.constant 2 : index
    %c1_638 = arith.constant 1 : index
    %c1_639 = arith.constant 1 : index
    %560 = vector.load %arg5[%c2_637, %c1_638, %c1_639] : memref<4x16x18xf32, #tpu.memory_space<vmem>>, vector<1x8x16xf32>
    %561 = vector.shape_cast %560 : vector<1x8x16xf32> to vector<8x16xf32>
    %562 = arith.addf %559, %561 : vector<8x16xf32>
    %c2_640 = arith.constant 2 : index
    %c1_641 = arith.constant 1 : index
    %c2_642 = arith.constant 2 : index
    %563 = vector.load %arg5[%c2_640, %c1_641, %c2_642] : memref<4x16x18xf32, #tpu.memory_space<vmem>>, vector<1x8x16xf32>
    %564 = vector.shape_cast %563 : vector<1x8x16xf32> to vector<8x16xf32>
    %565 = arith.addf %562, %564 : vector<8x16xf32>
    %cst_643 = arith.constant -1.250000e-01 : f32
    %566 = vector.broadcast %cst_643 : f32 to vector<8x16xf32>
    %567 = arith.mulf %565, %566 : vector<8x16xf32>
    %c1_644 = arith.constant 1 : index
    %c0_645 = arith.constant 0 : index
    %c1_646 = arith.constant 1 : index
    %568 = vector.load %arg5[%c1_644, %c0_645, %c1_646] : memref<4x16x18xf32, #tpu.memory_space<vmem>>, vector<1x8x16xf32>
    %569 = vector.shape_cast %568 : vector<1x8x16xf32> to vector<8x16xf32>
    %c1_647 = arith.constant 1 : index
    %c2_648 = arith.constant 2 : index
    %c1_649 = arith.constant 1 : index
    %570 = vector.load %arg5[%c1_647, %c2_648, %c1_649] : memref<4x16x18xf32, #tpu.memory_space<vmem>>, vector<1x8x16xf32>
    %571 = vector.shape_cast %570 : vector<1x8x16xf32> to vector<8x16xf32>
    %572 = arith.addf %569, %571 : vector<8x16xf32>
    %cst_650 = arith.constant 6.250000e-02 : f32
    %573 = vector.broadcast %cst_650 : f32 to vector<8x16xf32>
    %574 = arith.mulf %572, %573 : vector<8x16xf32>
    %575 = arith.addf %567, %574 : vector<8x16xf32>
    %c0_651 = arith.constant 0 : index
    %c1_652 = arith.constant 1 : index
    %c1_653 = arith.constant 1 : index
    %576 = vector.load %arg5[%c0_651, %c1_652, %c1_653] : memref<4x16x18xf32, #tpu.memory_space<vmem>>, vector<1x8x16xf32>
    %577 = vector.shape_cast %576 : vector<1x8x16xf32> to vector<8x16xf32>
    %c0_654 = arith.constant 0 : index
    %c1_655 = arith.constant 1 : index
    %c2_656 = arith.constant 2 : index
    %578 = vector.load %arg5[%c0_654, %c1_655, %c2_656] : memref<4x16x18xf32, #tpu.memory_space<vmem>>, vector<1x8x16xf32>
    %579 = vector.shape_cast %578 : vector<1x8x16xf32> to vector<8x16xf32>
    %580 = arith.addf %577, %579 : vector<8x16xf32>
    %cst_657 = arith.constant 5.000000e-01 : f32
    %581 = vector.broadcast %cst_657 : f32 to vector<8x16xf32>
    %582 = arith.mulf %580, %581 : vector<8x16xf32>
    %583 = arith.addf %575, %582 : vector<8x16xf32>
    %c1_658 = arith.constant 1 : index
    %c1_659 = arith.constant 1 : index
    %c1_660 = arith.constant 1 : index
    %584 = vector.load %arg5[%c1_658, %c1_659, %c1_660] : memref<4x16x18xf32, #tpu.memory_space<vmem>>, vector<1x8x16xf32>
    %585 = vector.shape_cast %584 : vector<1x8x16xf32> to vector<8x16xf32>
    %cst_661 = arith.constant 6.250000e-01 : f32
    %586 = vector.broadcast %cst_661 : f32 to vector<8x16xf32>
    %587 = arith.mulf %585, %586 : vector<8x16xf32>
    %588 = arith.addf %583, %587 : vector<8x16xf32>
    %c0_662 = arith.constant 0 : index
    %c9_663 = arith.constant 9 : index
    %c8_664 = arith.constant 8 : index
    %c0_665 = arith.constant 0 : index
    %589 = vector.load %arg4[%c0_662, %c9_663, %c8_664, %c0_665] : memref<1x12x16x16xf32, #tpu.memory_space<vmem>>, vector<1x1x8x16xf32>
    %590 = vector.shape_cast %589 : vector<1x1x8x16xf32> to vector<8x16xf32>
    %591 = vector.shape_cast %588 : vector<8x16xf32> to vector<1x1x8x16xf32>
    tpu.vector_store %arg4[%c0_662, %c9_663, %c8_664, %c0_665], %591 {strides = array<i32>} : memref<1x12x16x16xf32, #tpu.memory_space<vmem>>, vector<1x1x8x16xf32>,
    %c2_666 = arith.constant 2 : index
    %c0_667 = arith.constant 0 : index
    %c1_668 = arith.constant 1 : index
    %592 = vector.load %arg5[%c2_666, %c0_667, %c1_668] : memref<4x16x18xf32, #tpu.memory_space<vmem>>, vector<1x8x16xf32>
    %593 = vector.shape_cast %592 : vector<1x8x16xf32> to vector<8x16xf32>
    %c1_669 = arith.constant 1 : index
    %c1_670 = arith.constant 1 : index
    %c0_671 = arith.constant 0 : index
    %594 = vector.load %arg5[%c1_669, %c1_670, %c0_671] : memref<4x16x18xf32, #tpu.memory_space<vmem>>, vector<1x8x16xf32>
    %595 = vector.shape_cast %594 : vector<1x8x16xf32> to vector<8x16xf32>
    %596 = arith.addf %593, %595 : vector<8x16xf32>
    %c1_672 = arith.constant 1 : index
    %c1_673 = arith.constant 1 : index
    %c1_674 = arith.constant 1 : index
    %597 = vector.load %arg5[%c1_672, %c1_673, %c1_674] : memref<4x16x18xf32, #tpu.memory_space<vmem>>, vector<1x8x16xf32>
    %598 = vector.shape_cast %597 : vector<1x8x16xf32> to vector<8x16xf32>
    %599 = arith.addf %596, %598 : vector<8x16xf32>
    %c1_675 = arith.constant 1 : index
    %c2_676 = arith.constant 2 : index
    %c0_677 = arith.constant 0 : index
    %600 = vector.load %arg5[%c1_675, %c2_676, %c0_677] : memref<4x16x18xf32, #tpu.memory_space<vmem>>, vector<1x8x16xf32>
    %601 = vector.shape_cast %600 : vector<1x8x16xf32> to vector<8x16xf32>
    %602 = arith.addf %599, %601 : vector<8x16xf32>
    %c1_678 = arith.constant 1 : index
    %c2_679 = arith.constant 2 : index
    %c1_680 = arith.constant 1 : index
    %603 = vector.load %arg5[%c1_678, %c2_679, %c1_680] : memref<4x16x18xf32, #tpu.memory_space<vmem>>, vector<1x8x16xf32>
    %604 = vector.shape_cast %603 : vector<1x8x16xf32> to vector<8x16xf32>
    %605 = arith.addf %602, %604 : vector<8x16xf32>
    %c2_681 = arith.constant 2 : index
    %c2_682 = arith.constant 2 : index
    %c1_683 = arith.constant 1 : index
    %606 = vector.load %arg5[%c2_681, %c2_682, %c1_683] : memref<4x16x18xf32, #tpu.memory_space<vmem>>, vector<1x8x16xf32>
    %607 = vector.shape_cast %606 : vector<1x8x16xf32> to vector<8x16xf32>
    %608 = arith.addf %605, %607 : vector<8x16xf32>
    %cst_684 = arith.constant -1.250000e-01 : f32
    %609 = vector.broadcast %cst_684 : f32 to vector<8x16xf32>
    %610 = arith.mulf %608, %609 : vector<8x16xf32>
    %c2_685 = arith.constant 2 : index
    %c1_686 = arith.constant 1 : index
    %c0_687 = arith.constant 0 : index
    %611 = vector.load %arg5[%c2_685, %c1_686, %c0_687] : memref<4x16x18xf32, #tpu.memory_space<vmem>>, vector<1x8x16xf32>
    %612 = vector.shape_cast %611 : vector<1x8x16xf32> to vector<8x16xf32>
    %c2_688 = arith.constant 2 : index
    %c1_689 = arith.constant 1 : index
    %c2_690 = arith.constant 2 : index
    %613 = vector.load %arg5[%c2_688, %c1_689, %c2_690] : memref<4x16x18xf32, #tpu.memory_space<vmem>>, vector<1x8x16xf32>
    %614 = vector.shape_cast %613 : vector<1x8x16xf32> to vector<8x16xf32>
    %615 = arith.addf %612, %614 : vector<8x16xf32>
    %cst_691 = arith.constant 6.250000e-02 : f32
    %616 = vector.broadcast %cst_691 : f32 to vector<8x16xf32>
    %617 = arith.mulf %615, %616 : vector<8x16xf32>
    %618 = arith.addf %610, %617 : vector<8x16xf32>
    %c0_692 = arith.constant 0 : index
    %c1_693 = arith.constant 1 : index
    %c1_694 = arith.constant 1 : index
    %619 = vector.load %arg5[%c0_692, %c1_693, %c1_694] : memref<4x16x18xf32, #tpu.memory_space<vmem>>, vector<1x8x16xf32>
    %620 = vector.shape_cast %619 : vector<1x8x16xf32> to vector<8x16xf32>
    %c0_695 = arith.constant 0 : index
    %c2_696 = arith.constant 2 : index
    %c1_697 = arith.constant 1 : index
    %621 = vector.load %arg5[%c0_695, %c2_696, %c1_697] : memref<4x16x18xf32, #tpu.memory_space<vmem>>, vector<1x8x16xf32>
    %622 = vector.shape_cast %621 : vector<1x8x16xf32> to vector<8x16xf32>
    %623 = arith.addf %620, %622 : vector<8x16xf32>
    %cst_698 = arith.constant 5.000000e-01 : f32
    %624 = vector.broadcast %cst_698 : f32 to vector<8x16xf32>
    %625 = arith.mulf %623, %624 : vector<8x16xf32>
    %626 = arith.addf %618, %625 : vector<8x16xf32>
    %c2_699 = arith.constant 2 : index
    %c1_700 = arith.constant 1 : index
    %c1_701 = arith.constant 1 : index
    %627 = vector.load %arg5[%c2_699, %c1_700, %c1_701] : memref<4x16x18xf32, #tpu.memory_space<vmem>>, vector<1x8x16xf32>
    %628 = vector.shape_cast %627 : vector<1x8x16xf32> to vector<8x16xf32>
    %cst_702 = arith.constant 6.250000e-01 : f32
    %629 = vector.broadcast %cst_702 : f32 to vector<8x16xf32>
    %630 = arith.mulf %628, %629 : vector<8x16xf32>
    %631 = arith.addf %626, %630 : vector<8x16xf32>
    %c0_703 = arith.constant 0 : index
    %c10_704 = arith.constant 10 : index
    %c8_705 = arith.constant 8 : index
    %c0_706 = arith.constant 0 : index
    %632 = vector.load %arg4[%c0_703, %c10_704, %c8_705, %c0_706] : memref<1x12x16x16xf32, #tpu.memory_space<vmem>>, vector<1x1x8x16xf32>
    %633 = vector.shape_cast %632 : vector<1x1x8x16xf32> to vector<8x16xf32>
    %634 = vector.shape_cast %631 : vector<8x16xf32> to vector<1x1x8x16xf32>
    tpu.vector_store %arg4[%c0_703, %c10_704, %c8_705, %c0_706], %634 {strides = array<i32>} : memref<1x12x16x16xf32, #tpu.memory_space<vmem>>, vector<1x1x8x16xf32>,
    %c3_707 = arith.constant 3 : index
    %c0_708 = arith.constant 0 : index
    %c1_709 = arith.constant 1 : index
    %635 = vector.load %arg5[%c3_707, %c0_708, %c1_709] : memref<4x16x18xf32, #tpu.memory_space<vmem>>, vector<1x8x16xf32>
    %636 = vector.shape_cast %635 : vector<1x8x16xf32> to vector<8x16xf32>
    %c3_710 = arith.constant 3 : index
    %c1_711 = arith.constant 1 : index
    %c0_712 = arith.constant 0 : index
    %637 = vector.load %arg5[%c3_710, %c1_711, %c0_712] : memref<4x16x18xf32, #tpu.memory_space<vmem>>, vector<1x8x16xf32>
    %638 = vector.shape_cast %637 : vector<1x8x16xf32> to vector<8x16xf32>
    %639 = arith.addf %636, %638 : vector<8x16xf32>
    %c3_713 = arith.constant 3 : index
    %c1_714 = arith.constant 1 : index
    %c2_715 = arith.constant 2 : index
    %640 = vector.load %arg5[%c3_713, %c1_714, %c2_715] : memref<4x16x18xf32, #tpu.memory_space<vmem>>, vector<1x8x16xf32>
    %641 = vector.shape_cast %640 : vector<1x8x16xf32> to vector<8x16xf32>
    %642 = arith.addf %639, %641 : vector<8x16xf32>
    %c3_716 = arith.constant 3 : index
    %c2_717 = arith.constant 2 : index
    %c1_718 = arith.constant 1 : index
    %643 = vector.load %arg5[%c3_716, %c2_717, %c1_718] : memref<4x16x18xf32, #tpu.memory_space<vmem>>, vector<1x8x16xf32>
    %644 = vector.shape_cast %643 : vector<1x8x16xf32> to vector<8x16xf32>
    %645 = arith.addf %642, %644 : vector<8x16xf32>
    %cst_719 = arith.constant -1.875000e-01 : f32
    %646 = vector.broadcast %cst_719 : f32 to vector<8x16xf32>
    %647 = arith.mulf %645, %646 : vector<8x16xf32>
    %c0_720 = arith.constant 0 : index
    %c1_721 = arith.constant 1 : index
    %c1_722 = arith.constant 1 : index
    %648 = vector.load %arg5[%c0_720, %c1_721, %c1_722] : memref<4x16x18xf32, #tpu.memory_space<vmem>>, vector<1x8x16xf32>
    %649 = vector.shape_cast %648 : vector<1x8x16xf32> to vector<8x16xf32>
    %c0_723 = arith.constant 0 : index
    %c1_724 = arith.constant 1 : index
    %c2_725 = arith.constant 2 : index
    %650 = vector.load %arg5[%c0_723, %c1_724, %c2_725] : memref<4x16x18xf32, #tpu.memory_space<vmem>>, vector<1x8x16xf32>
    %651 = vector.shape_cast %650 : vector<1x8x16xf32> to vector<8x16xf32>
    %652 = arith.addf %649, %651 : vector<8x16xf32>
    %c0_726 = arith.constant 0 : index
    %c2_727 = arith.constant 2 : index
    %c1_728 = arith.constant 1 : index
    %653 = vector.load %arg5[%c0_726, %c2_727, %c1_728] : memref<4x16x18xf32, #tpu.memory_space<vmem>>, vector<1x8x16xf32>
    %654 = vector.shape_cast %653 : vector<1x8x16xf32> to vector<8x16xf32>
    %655 = arith.addf %652, %654 : vector<8x16xf32>
    %c0_729 = arith.constant 0 : index
    %c2_730 = arith.constant 2 : index
    %c2_731 = arith.constant 2 : index
    %656 = vector.load %arg5[%c0_729, %c2_730, %c2_731] : memref<4x16x18xf32, #tpu.memory_space<vmem>>, vector<1x8x16xf32>
    %657 = vector.shape_cast %656 : vector<1x8x16xf32> to vector<8x16xf32>
    %658 = arith.addf %655, %657 : vector<8x16xf32>
    %cst_732 = arith.constant 2.500000e-01 : f32
    %659 = vector.broadcast %cst_732 : f32 to vector<8x16xf32>
    %660 = arith.mulf %658, %659 : vector<8x16xf32>
    %661 = arith.addf %647, %660 : vector<8x16xf32>
    %c3_733 = arith.constant 3 : index
    %c1_734 = arith.constant 1 : index
    %c1_735 = arith.constant 1 : index
    %662 = vector.load %arg5[%c3_733, %c1_734, %c1_735] : memref<4x16x18xf32, #tpu.memory_space<vmem>>, vector<1x8x16xf32>
    %663 = vector.shape_cast %662 : vector<1x8x16xf32> to vector<8x16xf32>
    %cst_736 = arith.constant 7.500000e-01 : f32
    %664 = vector.broadcast %cst_736 : f32 to vector<8x16xf32>
    %665 = arith.mulf %663, %664 : vector<8x16xf32>
    %666 = arith.addf %661, %665 : vector<8x16xf32>
    %c0_737 = arith.constant 0 : index
    %c11_738 = arith.constant 11 : index
    %c8_739 = arith.constant 8 : index
    %c0_740 = arith.constant 0 : index
    %667 = vector.load %arg4[%c0_737, %c11_738, %c8_739, %c0_740] : memref<1x12x16x16xf32, #tpu.memory_space<vmem>>, vector<1x1x8x16xf32>
    %668 = vector.shape_cast %667 : vector<1x1x8x16xf32> to vector<8x16xf32>
    %669 = vector.shape_cast %666 : vector<8x16xf32> to vector<1x1x8x16xf32>
    tpu.vector_store %arg4[%c0_737, %c11_738, %c8_739, %c0_740], %669 {strides = array<i32>} : memref<1x12x16x16xf32, #tpu.memory_space<vmem>>, vector<1x1x8x16xf32>,
    return
  }
  func.func @transform_0(%arg0: i32, %arg1: i32) -> (i32, i32, i32, i32) {
    %c0_i32 = arith.constant 0 : i32
    %c0_i32_0 = arith.constant 0 : i32
    %c0_i32_1 = arith.constant 0 : i32
    return %arg0, %c0_i32, %arg1, %c0_i32_0 : i32, i32, i32, i32
  }
  func.func @transform_1(%arg0: i32, %arg1: i32) -> (i32, i32, i32, i32) {
    %c1_i32 = arith.constant 1 : i32
    %0 = arith.addi %arg1, %c1_i32 : i32
    %c2_i32 = arith.constant 2 : i32
    %1 = arith.muli %0, %c2_i32 : i32
    %c0_i32 = arith.constant 0 : i32
    %c0_i32_0 = arith.constant 0 : i32
    %c0_i32_1 = arith.constant 0 : i32
    return %arg0, %c0_i32, %1, %c0_i32_0 : i32, i32, i32, i32
  }
  func.func @transform_2(%arg0: i32, %arg1: i32) -> (i32, i32, i32, i32) {
    %c0_i32 = arith.constant 0 : i32
    %c0_i32_0 = arith.constant 0 : i32
    %c0_i32_1 = arith.constant 0 : i32
    return %arg0, %c0_i32, %arg1, %c0_i32_0 : i32, i32, i32, i32
  }
}

</mosaic_0001>

<bundles_post_ra>
// kernel: tpu_custom_call.1
= control target key start
LH: loop header
LB: loop body
LE: loop exit
PB: predicated region body
PF: predicated region fallthrough
CT: control target
= control target key end

     0   :  { %7 = vsyncpa [#allocation6], 0  ;;  %s2123_s0 = inlined_call_operand.vmem [shape: f32[2,4,24,18], index: 0, kind: input, shape index: {}]   ;;  %s2124_s1 = inlined_call_operand.vmem [shape: f32[2,4,24,18], index: 1, kind: input, shape index: {}]   ;;  %s2125_s2 = inlined_call_operand.hbm [shape: f32[2,12,16,16], index: 2, kind: output, shape index: {}]  }
   0x1   :  { %9 = vsyncpa [#allocation6 + $0x1], 0  ;;  %s1581_s9 = smov 0   ;;  %s1583_s10 = smov 0  }
   0x2   :  { %s1585_s11 = smov 0   ;;  %s1587_s12 = smov 0  }
   0x3   :  { %s1589_s13 = smov 0   ;;  %s1591_s14 = smov 0  }
   0x4 LB: > { %s1278_s15 = sadd.s32 4294967295, %s1555_s14   ;;  %s1279_s16 = sadd.s32 4294967294, %s1555_s14   ;;  %s1555_s14 = sphi %s1591_s14, %s15_s14   ;;  %s1551_s13 = sphi %s1589_s13, %s2133_s13   ;;  %s1547_s12 = sphi %s1587_s12, %s2132_s12   ;;  %s1543_s11 = sphi %s1585_s11, %s2131_s11   ;;  %s1539_s10 = sphi %s1583_s10, %s2130_s10   ;;  %s1535_s9 = sphi %s1581_s9, %s2129_s9  }
   0x5   : > { %s27_s17 = sadd.s32 1, %s1551_s13  ;;  %s36_s18 = sadd.s32 1, %s1543_s11 }
   0x6   : > { %p29_p0 = scmp.ge.s32.totalorder %s27_s17, 2  ;;  %p43_p1 = scmp.ne.s32.totalorder %s1543_s11, %s1539_s10 }
   0x7   : > { %p44_p2 = scmp.eq.s32.totalorder %s1555_s14, 0  ;;  %p107_p3 = scmp.eq.s32.totalorder %s1278_s15, 1 }
   0x8   : > { %s2135_s17 = smov (%p29_p0, %s27_s17), 0  ;;  %p112_p6 = scmp.ne.s32.totalorder %s1539_s10, %s1535_s9 }
   0x9   : > { %p1620_p4 = por %p44_p2, %p43_p1  ;;  %p1624_p5 = por %p107_p3, %p43_p1 }
   0xa   : > { %s31_s21 = ssub.s32 %s1551_s13, %s2135_s17  ;;  %p113_p8 = scmp.eq.s32.totalorder %s1279_s16, 1 }
   0xb   : > { %p34_p7 = scmp.eq.s32.totalorder %s31_s21, 0  ;;  %p1281_p10 = scmp.ge.s32.totalorder %s1555_s14, 2 }
   0xc   : > { %p1635_p9 = por %p113_p8, %p112_p6 }
   0xd   : > { %s1633_s22 = scalar_select %p34_p7, %s1543_s11, %s36_s18  }
   0xe   : > { %129 = sbr.rel (%p1281_p10) target bundleno = 42 (0x2a), region = 16 }
  0x13   : > { %132 = sbr.rel (!%p1620_p4) target bundleno = 33 (0x21), region = 20  ;;  %s134_s24 = sand.u32 (%p1620_p4), 1, %s1543_s11  }
  0x14   : > { %s1366_s25 = smul.u32 (%p1620_p4), 96, %s1551_s13  ;;  %s1282_s26 = sshll.u32 (%p1620_p4), %s134_s24, 6 }
  0x15   : > { %s136_s30 = scalar_lea.vmem (%p1620_p4), [#allocation3], %s1282_s26   ;;  %s1557_s3 = smov (%p1620_p4), 0  }
  0x16   : > { %s146_s29 = scalar_lea.vmem (%p1620_p4), %s2123_s0, %s1366_s25  }
  0x18 LB: >> { %v232_v0 = vld [vmem:[%s146_s29] sm:$0xff]  ;;  %v234_v1 = vld [vmem:[%s146_s29 + $0x8] sm:$0xff]  ;;  %v236_v2 = vld [vmem:[%s146_s29 + $0x18] sm:$0xff]  ;;  %s226_s3 = sadd.s32 1, %s1559_s3   ;;  %s1559_s3 = sphi %s1557_s3, %s226_s3  }
  0x19   : >> { %233 = vst [vmem:[%s136_s30] sm:$0xff] %v232_v0  ;;  %v238_v3 = vld [vmem:[%s146_s29 + $0x20] sm:$0xff]  ;;  %v240_v4 = vld [vmem:[%s146_s29 + $0x30] sm:$0xff]  ;;  %v242_v5 = vld [vmem:[%s146_s29 + $0x38] sm:$0xff]  ;;  %p225_p11 = scmp.ge.s32.totalorder %s226_s3, 1 }
  0x1a   : >> { %235 = vst [vmem:[%s136_s30 + $0x8] sm:$0xff] %v234_v1  ;;  %v244_v6 = vld [vmem:[%s146_s29 + $0x48] sm:$0xff]  ;;  %v246_v7 = vld [vmem:[%s146_s29 + $0x50] sm:$0xff] }
  0x1b   : >> { %237 = vst [vmem:[%s136_s30 + $0x10] sm:$0xff] %v236_v2 }
  0x1c   : >> { %239 = vst [vmem:[%s136_s30 + $0x18] sm:$0xff] %v238_v3  ;;  %228 = sbr.rel (!%p225_p11) target bundleno = 24 (0x18), region = 191 }
  0x1d   : >> { %241 = vst [vmem:[%s136_s30 + $0x20] sm:$0xff] %v240_v4 }
  0x1e   : >> { %243 = vst [vmem:[%s136_s30 + $0x28] sm:$0xff] %v242_v5 }
  0x1f   : >> { %245 = vst [vmem:[%s136_s30 + $0x30] sm:$0xff] %v244_v6 }
  0x20   : >> { %247 = vst [vmem:[%s136_s30 + $0x38] sm:$0xff] %v246_v7 }
  0x21 PF: > { %291 = sbr.rel (!%p1620_p4) target bundleno = 42 (0x2a), region = 72  ;;  %s293_s4 = sand.u32 (%p1620_p4), 1, %s1543_s11  }
  0x22   : > { %s1293_s5 = smul.u32 (%p1620_p4), 96, %s1551_s13  ;;  %s1292_s6 = sshll.u32 (%p1620_p4), %s293_s4, 5 }
  0x23   : > { %s295_s16 = scalar_lea.vmem (%p1620_p4), [#allocation4], %s1292_s6 }
  0x24   : > { %s1187_s15 = scalar_lea.vmem (%p1620_p4), %s2124_s1, %s1293_s5 }
  0x25   : > { %v1294_v8 = vld [vmem:[%s1187_s15 + $0x10] sm:$0xff] (%p1620_p4)  ;;  %v1295_v9 = vld [vmem:[%s1187_s15 + $0x28] sm:$0xff] (%p1620_p4)  ;;  %v1296_v10 = vld [vmem:[%s1187_s15 + $0x40] sm:$0xff] (%p1620_p4) }
  0x26   : > { %337 = vst [vmem:[%s295_s16] sm:$0xff] %v1294_v8  ;;  %v1297_v11 = vld [vmem:[%s1187_s15 + $0x58] sm:$0xff] }
  0x27   : > { %339 = vst [vmem:[%s295_s16 + $0x8] sm:$0xff] %v1295_v9 }
  0x28   : > { %341 = vst [vmem:[%s295_s16 + $0x10] sm:$0xff] %v1296_v10 }
  0x29   : > { %343 = vst [vmem:[%s295_s16 + $0x18] sm:$0xff] %v1297_v11 }
  0x2a PF: > { %p1298_p12 = scmp.ge.s32.totalorder %s1555_s14, 1  ;;  %p348_p13 = scmp.lt.s32.totalorder %s1555_s14, 3 }
  0x2c   : > { %p349_p0 = pnand %p1298_p12, %p348_p13 }
  0x2d   : > { %s1659_s18 = sand.u32 (!%p349_p0), 1, %s1539_s10   ;;  %s1561_s24 = smov (!%p349_p0), 126  }
  0x2e   : > { %352 = sbr.rel (%p349_p0) target bundleno = 583 (0x247), region = 110  ;;  %s1299_s19 = sshll.u32 (!%p349_p0), %s1659_s18, 6 }
  0x2f   : > { %s1662_s21 = scalar_lea.vmem (!%p349_p0), [#allocation3], %s1299_s19  ;;  %s1562_s25 = smov (!%p349_p0), 127  }
  0x30   : > { %s1563_s26 = smov (!%p349_p0), 1   ;;  %s1300_s27 = sshll.u32 (!%p349_p0), %s1659_s18, 5 }
  0x31   : > { %s1738_s28 = scalar_lea.vmem (!%p349_p0), [#allocation4], %s1300_s27  ;;  %s1367_s29 = smul.u32 (!%p349_p0), 192, %s1659_s18 }
  0x32   : > { %s1368_s3 = smul.u32 (!%p349_p0), 192, %s1547_s12  ;;  %s1109_s15 = scalar_lea.sflag (!%p349_p0), [#allocation6], %s1659_s18 }
  0x33   : > { %v1665_v12 = vld [vmem:[%s1662_s21 + $0x11] sm:$0xff]  ;;  %v1671_v14 = vld [vmem:[%s1662_s21 + $0x1] sm:$0xff]  ;;  %vm399_vm0 = vcmask 146432   ;;  %vm452_vm1 = vcmask 130048   ;;  %s1810_s30 = scalar_lea.vmem [#allocation5], %s1367_s29 }
  0x34   : > { %v1668_v13 = vld [vmem:[%s1662_s21 + $0x30] sm:$0xff]  ;;  %476 = vrot.lane.b32.xlu2 %v1665_v12, %s1561_s24  ;;  %415 = vrot.lane.b32.xlu0 %v1671_v14, %s1563_s26  ;;  %v1683_v16 = vld [vmem:[%s1662_s21 + $0x20] sm:$0xff]  ;;  %s1122_s6 = scalar_lea.hbm %s2125_s2, %s1368_s3  ;;  %s1123_s7 = sshll.u32 %s1810_s30, 4  ;;  %s1124_s7 = int_to_ptr.vmem [resolvable:$true] %s1123_s7 }
  0x35   : > { %429 = vrot.lane.b32.xlu1 %v1668_v13, %s1562_s25  ;;  %v1680_v15 = vld [vmem:[%s1662_s21 + $0x31] sm:$0xff]  ;;  %v1686_v17 = vld [vmem:[%s1662_s21 + $0x22] sm:$0xff]  ;;  %s1125_s8 = sshll.u32 %s1122_s6, 4  ;;  %s1126_s8 = int_to_ptr.hbm [resolvable:$true] %s1125_s8 }
  0x36   : > { %v522_v18 = vadd.f32 %v1686_v17, %v1683_v16  ;;  %v1697_v20 = vld [vmem:[%s1662_s21 + $0x21] sm:$0xff]  ;;  %v1705_v21 = vld [vmem:[%s1662_s21 + $0x12] sm:$0xff]  ;;  %s1475_s16 = sshra.s32 %s1126_s8, 4  ;;  %s1476_s16 = int_to_ptr.hbm [resolvable:$true] %s1475_s16 }
  0x37   : > { %v1714_v22 = vmul.f32 0.625, %v1697_v20  ;;  %v398_v23 = vld [vmem:[%s1662_s21 + $0x38] sm:$0xff]  ;;  %v395_v24 = vld [vmem:[%s1662_s21 + $0x8] sm:$0xff]  ;;  %v404_v25 = vld [vmem:[%s1738_s28] sm:$0xff]  ;;  %s1477_s19 = scalar_lea.hbm %s1476_s16, 192  ;;  %p1482_p4 = scmp.lt.s32.totalorder %s1476_s16, %s2125_s2 }
  0x38   : > { %v523_v19 = vmul.f32 0.0625, %v522_v18  ;;  %403 = vst.msk [vmem:[#allocation2 + $0x30] sm:$0xff] %vm399_vm0, %v398_v23  ;;  %v407_v26 = vld [vmem:[%s1738_s28 + $0x18] sm:$0xff]  ;;  %v405_v28 = vld [vmem:[%s1738_s28 + $0x8] sm:$0xff]  ;;  %v406_v36 = vld [vmem:[%s1738_s28 + $0x10] sm:$0xff]  ;;  %p1478_p1 = scmp.ne.s32.totalorder %s1476_s16, %s1477_s19 }
  0x39   : > { %400 = vst.msk [vmem:[#allocation2] sm:$0xff] %vm399_vm0, %v395_v24  ;;  %v396_v27 = vld [vmem:[%s1662_s21 + $0x18] sm:$0xff]  ;;  %v1784_v32 = vld [vmem:[%s1662_s21 + $0x2] sm:$0xff]  ;;  %v1821_v54 = vld [vmem:[%s1662_s21 + $0x10] sm:$0xff] }
  0x3a   : > { %408 = vst.msk [vmem:[#allocation2 + $0x8] sm:$0xff] %vm399_vm0, %v404_v25  ;;  %v397_v35 = vld [vmem:[%s1662_s21 + $0x28] sm:$0xff]  ;;  %v412_v42 = vld [vmem:[%s1662_s21] sm:$0xff]  ;;  %v458_v55 = vadd.f32 %v1683_v16, %v1821_v54  ;;  %p1479_p2 = pnand %p1478_p1, %p1624_p5 }
  0x3b   : > { %411 = vst.msk [vmem:[#allocation2 + $0x38] sm:$0xff] %vm399_vm0, %v407_v26 }
  0x3c   : > { %501 = vrot.lane.b32.xlu2 %v1665_v12, %s1562_s25  ;;  %419 = vrot.lane.b32.xlu0 %v1671_v14, %s1562_s25  ;;  %401 = vst.msk [vmem:[#allocation2 + $0x10] sm:$0xff] %vm399_vm0, %v396_v27  ;;  %p1480_p3 = pneg %p1479_p2 }
  0x3d   : > { %436 = vrot.lane.b32.xlu1 %v1680_v15, %s1562_s25  ;;  %409 = vst.msk [vmem:[#allocation2 + $0x18] sm:$0xff] %vm399_vm0, %v405_v28 }
  0x3e   : > { %402 = vst.msk [vmem:[#allocation2 + $0x20] sm:$0xff] %vm399_vm0, %v397_v35 }
  0x3f   : > { %v1773_v29 = vld [vmem:[#allocation2 + $0x30] sm:$0xff]  ;;  %410 = vst.msk [vmem:[#allocation2 + $0x28] sm:$0xff] %vm399_vm0, %v406_v36 }
  0x41   : > { %v1775_v30 = vld [vmem:[#allocation2 + $0x1] sm:$0xff] }
  0x42   : > { %v1786_v33 = vld [vmem:[#allocation2 + $0x31] sm:$0xff] }
  0x44   : > { %525 = vrot.lane.b32.xlu2 %v523_v19, %s1562_s25  ;;  %460 = vrot.lane.b32.xlu0 %v1683_v16, %s1562_s25  ;;  %v1788_v34 = vld [vmem:[#allocation2 + $0x11] sm:$0xff] }
  0x45   : > { %467 = vrot.lane.b32.xlu1 %v1697_v20, %s1562_s25 }
  0x46   : > { %v1805_v41 = vld [vmem:[#allocation2 + $0x21] sm:$0xff] }
  0x4c   : > { %547 = vrot.lane.b32.xlu2 %v1697_v20, %s1562_s25  ;;  %508 = vrot.lane.b32.xlu0 %v1697_v20, %s1561_s24 }
  0x4d   : > { %515 = vrot.lane.b32.xlu1 %v1705_v21, %s1562_s25 }
  0x54   : > { %569 = vrot.lane.b32.xlu2 %v1665_v12, %s1563_s26  ;;  %531 = vrot.lane.b32.xlu0 %v1680_v15, %s1562_s25 }
  0x55   : > { %539 = vrot.lane.b32.xlu1 %v1714_v22, %s1562_s25 }
  0x5c   : > { %595 = vrot.lane.b32.xlu2 %v1680_v15, %s1562_s25  ;;  %555 = vrot.lane.b32.xlu0 %v1671_v14, %s1563_s26 }
  0x5d   : > { %559 = vrot.lane.b32.xlu1 %v1671_v14, %s1562_s25 }
  0x64   : > { %618 = vrot.lane.b32.xlu2 %v1697_v20, %s1562_s25  ;;  %603 = vrot.lane.b32.xlu0 %v1680_v15, %s1563_s26 }
  0x65   : > { %588 = vrot.lane.b32.xlu1 %v1671_v14, %s1562_s25 }
  0x6c   : > { %643 = vrot.lane.b32.xlu2 %v1683_v16, %s1562_s25  ;;  %649 = vrot.lane.b32.xlu0 %v1665_v12, %s1563_s26 }
  0x6d   : > { %607 = vrot.lane.b32.xlu1 %v1680_v15, %s1562_s25 }
  0x74   : > { %660 = vrot.lane.b32.xlu2 %v1697_v20, %s1562_s25  ;;  %672 = vrot.lane.b32.xlu0 %v1671_v14, %s1562_s25 }
  0x75   : > { %636 = vrot.lane.b32.xlu1 %v1665_v12, %s1562_s25 }
  0x7c   : > { %689 = vrot.lane.b32.xlu2 %v1665_v12, %s1563_s26  ;;  %696 = vrot.lane.b32.xlu0 %v1705_v21, %s1563_s26 }
  0x7d   : > { %653 = vrot.lane.b32.xlu1 %v1665_v12, %s1562_s25 }
  0x84   : > { %736 = vrot.lane.b32.xlu2 %v1680_v15, %s1562_s25  ;;  %745 = vrot.lane.b32.xlu0 %v1671_v14, %s1562_s25 }
  0x85   : > { %706 = vrot.lane.b32.xlu1 %v1697_v20, %s1561_s24 }
  0x8c   : > { %783 = vrot.lane.b32.xlu2 %v1773_v29, %s1562_s25  ;;  %769 = vrot.lane.b32.xlu0 %v1775_v30, %s1563_s26 }
  0x8d   : > { %732 = vrot.lane.b32.xlu1 %v1680_v15, %s1563_s26 }
  0x8e   : > { %v477_v31 = vpop.permute.xlu2 %476 }
  0x8f   : > { %v479_v37 = vadd.f32 %v1665_v12, %v477_v31 }
  0x91   : > { %v480_v39 = vmul.f32 0.0625, %v479_v37  ;;  %v1839_v37 = vld [vmem:[#allocation2 + $0x20] sm:$0xff] }
  0x94   : > { %790 = vrot.lane.b32.xlu2 %v1786_v33, %s1562_s25  ;;  %829 = vrot.lane.b32.xlu0 %v1788_v34, %s1561_s24 }
  0x95   : > { %752 = vrot.lane.b32.xlu1 %v1784_v32, %s1562_s25 }
  0x96   : > { %v502_v38 = vpop.permute.xlu2 %501 }
  0x97   : > { %v504_v60 = vadd.f32 %v1665_v12, %v502_v38 }
  0x99   : > { %v506_v1 = vadd.f32 %v1697_v20, %v504_v60 }
  0x9c   : > { %482 = vrot.lane.b32.xlu0 %v480_v39, %s1563_s26  ;;  %813 = vrot.lane.b32.xlu2 %v1839_v37, %s1562_s25  ;;  %v578_v39 = vmul.f32 0.5, %v1671_v14 }
  0x9d   : > { %773 = vrot.lane.b32.xlu1 %v1775_v30, %s1562_s25 }
  0x9e   : > { %v526_v40 = vpop.permute.xlu2 %525 }
  0xa5   : > { %1050 = vrot.lane.b32.xlu1 %v1805_v41, %s1561_s24 }
  0xa6   : > { %v548_v43 = vpop.permute.xlu2 %547  ;;  %v416_v46 = vpop.permute.xlu0 %415 }
  0xa7   : > { %v430_v44 = vpop.permute.xlu1 %429  ;;  %1319 = vst.msk [vmem:[%s1810_s30 + $0x30] sm:$0xff] %vm452_vm1, %v548_v43  ;;  %v418_v47 = vadd.f32 %v416_v46, %v412_v42 }
  0xa8   : > { %v432_v45 = vadd.f32 %v1668_v13, %v430_v44 }
  0xaa   : > { %v434_v48 = vadd.f32 %v1680_v15, %v432_v45 }
  0xae   : > { %v570_v49 = vpop.permute.xlu2 %569  ;;  %v420_v52 = vpop.permute.xlu0 %419 }
  0xaf   : > { %v437_v50 = vpop.permute.xlu1 %436  ;;  %v1818_v53 = vadd.f32 %v420_v52, %v418_v47  ;;  %v572_v11 = vadd.f32 %v1683_v16, %v570_v49 }
  0xb0   : > { %v1816_v51 = vadd.f32 %v437_v50, %v434_v48 }
  0xb1   : > { %v573_v24 = vadd.f32 %v1665_v12, %v572_v11 }
  0xb3   : > { %v575_v35 = vadd.f32 %v1697_v20, %v573_v24 }
  0xb6   : > { %v596_v56 = vpop.permute.xlu2 %595  ;;  %v461_v58 = vpop.permute.xlu0 %460 }
  0xb7   : > { %v468_v57 = vpop.permute.xlu1 %467  ;;  %1326 = vst.msk [vmem:[%s1810_s30 + $0x60] sm:$0xff] %vm452_vm1, %v596_v56  ;;  %v463_v59 = vadd.f32 %v461_v58, %v458_v55  ;;  %v1329_v55 = vld [vmem:[%s1662_s21 + $0x32] sm:$0xff] }
  0xb9   : > { %v465_v61 = vadd.f32 %v1697_v20, %v463_v59 }
  0xbb   : > { %v1829_v62 = vadd.f32 %v468_v57, %v465_v61  ;;  %v626_v61 = vmul.f32 0.5, %v1680_v15 }
  0xbe   : > { %v619_v63 = vpop.permute.xlu2 %618  ;;  %v509_v2 = vpop.permute.xlu0 %508 }
  0xbf   : > { %v516_v0 = vpop.permute.xlu1 %515  ;;  %v511_v3 = vadd.f32 %v509_v2, %v506_v1 }
  0xc1   : > { %v513_v4 = vadd.f32 %v1705_v21, %v511_v3 }
  0xc3   : > { %v518_v5 = vadd.f32 %v516_v0, %v513_v4 }
  0xc5   : > { %v519_v6 = vmul.f32 -0.125, %v518_v5 }
  0xc6   : > { %v644_v7 = vpop.permute.xlu2 %643  ;;  %v532_v9 = vpop.permute.xlu0 %531 }
  0xc7   : > { %v540_v8 = vpop.permute.xlu1 %539  ;;  %v534_v10 = vadd.f32 %v1680_v15, %v532_v9  ;;  %v528_v18 = vadd.f32 %v526_v40, %v519_v6  ;;  %v576_v40 = vmul.f32 0.25, %v575_v35  ;;  %v646_v9 = vadd.f32 %v1683_v16, %v644_v7 }
  0xc9   : > { %v535_v19 = vmul.f32 0.5, %v534_v10 }
  0xcb   : > { %v536_v23 = vadd.f32 %v535_v19, %v528_v18 }
  0xcd   : > { %v542_v25 = vadd.f32 %v540_v8, %v536_v23 }
  0xce   : > { %v661_v26 = vpop.permute.xlu2 %660  ;;  %v556_v28 = vpop.permute.xlu0 %555 }
  0xcf   : > { %v560_v27 = vpop.permute.xlu1 %559  ;;  %1317 = vst.msk [vmem:[%s1810_s30 + $0x20] sm:$0xff] %vm452_vm1, %v542_v25  ;;  %v558_v31 = vadd.f32 %v556_v28, %v412_v42  ;;  %v616_v42 = vadd.f32 %v1665_v12, %v1697_v20 }
  0xd1   : > { %v562_v36 = vadd.f32 %v560_v27, %v558_v31  ;;  %v621_v49 = vadd.f32 %v619_v63, %v616_v42 }
  0xd3   : > { %v564_v38 = vadd.f32 %v1784_v32, %v562_v36  ;;  %v623_v57 = vadd.f32 %v1705_v21, %v621_v49 }
  0xd5   : > { %v565_v43 = vmul.f32 -0.125, %v564_v38  ;;  %v624_v0 = vmul.f32 0.25, %v623_v57 }
  0xd6   : > { %v690_v44 = vpop.permute.xlu2 %689  ;;  %v604_v46 = vpop.permute.xlu0 %603 }
  0xd7   : > { %v589_v45 = vpop.permute.xlu1 %588  ;;  %v577_v47 = vadd.f32 %v576_v40, %v565_v43  ;;  %v606_v50 = vadd.f32 %v1668_v13, %v604_v46  ;;  %v692_v8 = vadd.f32 %v1683_v16, %v690_v44 }
  0xd8   : > { %1324 = vst.msk [vmem:[%s1810_s30 + $0x50] sm:$0xff] %vm452_vm1, %v589_v45  ;;  %v440_v45 = vmul.f32 0.25, %v1816_v51 }
  0xd9   : > { %v579_v48 = vadd.f32 %v578_v39, %v577_v47  ;;  %v693_v11 = vadd.f32 %v1665_v12, %v692_v8  ;;  %v491_v8 = vmul.f32 0.625, %v1665_v12  ;;  %v1907_v12 = vld [vmem:[#allocation2 + $0x12] sm:$0xff] }
  0xdb   : > { %581 = vrot.lane.b32.xlu0 %v579_v48, %s1562_s25 }
  0xde   : > { %v737_v52 = vpop.permute.xlu2 %736  ;;  %v650_v59 = vpop.permute.xlu0 %649 }
  0xdf   : > { %v608_v56 = vpop.permute.xlu1 %607  ;;  %v652_v18 = vadd.f32 %v650_v59, %v646_v9 }
  0xe0   : > { %v610_v58 = vadd.f32 %v608_v56, %v606_v50  ;;  %v758_v56 = vmul.f32 0.75, %v1680_v15 }
  0xe2   : > { %v612_v60 = vadd.f32 %v1329_v55, %v610_v58  ;;  %v1881_v58 = vld [vmem:[#allocation2] sm:$0xff] }
  0xe4   : > { %v613_v1 = vmul.f32 -0.125, %v612_v60  ;;  %v488_v60 = vadd.f32 %v1680_v15, %v1668_v13 }
  0xe6   : > { %v625_v2 = vadd.f32 %v624_v0, %v613_v1  ;;  %v784_v63 = vpop.permute.xlu2 %783  ;;  %v673_v4 = vpop.permute.xlu0 %672 }
  0xe7   : > { %v637_v3 = vpop.permute.xlu1 %636  ;;  %v786_v5 = vadd.f32 %v784_v63, %v1773_v29 }
  0xe8   : > { %1335 = vst.msk [vmem:[%s1810_s30 + $0x80] sm:$0xff] %vm452_vm1, %v637_v3  ;;  %v627_v6 = vadd.f32 %v626_v61, %v625_v2 }
  0xe9   : > { %v788_v10 = vadd.f32 %v1786_v33, %v786_v5  ;;  %v489_v5 = vmul.f32 0.5, %v488_v60 }
  0xea   : > { %629 = vrot.lane.b32.xlu0 %v627_v6, %s1562_s25 }
  0xee   : > { %v791_v23 = vpop.permute.xlu2 %790  ;;  %v697_v25 = vpop.permute.xlu0 %696 }
  0xef   : > { %v654_v19 = vpop.permute.xlu1 %653  ;;  %v793_v27 = vadd.f32 %v791_v23, %v788_v10  ;;  %v1862_v28 = vadd.f32 %v697_v25, %v693_v11 }
  0xf0   : > { %v656_v24 = vadd.f32 %v654_v19, %v652_v18 }
  0xf1   : > { %v794_v35 = vmul.f32 0.25, %v793_v27  ;;  %v1933_v27 = vld [vmem:[#allocation2 + $0x2] sm:$0xff] }
  0xf2   : > { %v658_v31 = vadd.f32 %v1697_v20, %v656_v24 }
  0xf3   : > { %796 = vrot.lane.b32.xlu0 %v794_v35, %s1563_s26  ;;  %v1946_v35 = vmul.f32 0.625, %v1805_v41 }
  0xf4   : > { %v663_v36 = vadd.f32 %v661_v26, %v658_v31  ;;  %v1943_v31 = vld [vmem:[#allocation2 + $0x22] sm:$0xff] }
  0xf6   : > { %v746_v38 = vpop.permute.xlu0 %745 }
  0xf7   : > { %v707_v16 = vpop.permute.xlu1 %706  ;;  %v748_v26 = vadd.f32 %v746_v38, %v1671_v14 }
  0xf8   : > { %v709_v7 = vadd.f32 %v1697_v20, %v707_v16  ;;  %v700_v16 = vadd.f32 %v1705_v21, %v1862_v28 }
  0xf9   : > { %v750_v46 = vadd.f32 %v1784_v32, %v748_v26 }
  0xfa   : > { %v710_v39 = vmul.f32 0.0625, %v709_v7  ;;  %v874_v7 = vadd.f32 %v1943_v31, %v1839_v37 }
  0xfb   : > { %820 = vrot.lane.b32.xlu0 %v1805_v41, %s1562_s25 }
  0xfc   : > { %712 = vrot.lane.b32.xlu2 %v710_v39, %s1563_s26  ;;  %v875_v39 = vmul.f32 0.0625, %v874_v7 }
  0xfe   : > { %v770_v44 = vpop.permute.xlu0 %769 }
  0xff   : > { %v733_v40 = vpop.permute.xlu1 %732  ;;  %v772_v0 = vadd.f32 %v770_v44, %v1881_v58 }
 0x100   : > { %v735_v43 = vadd.f32 %v1668_v13, %v733_v40  ;;  %v675_v13 = vadd.f32 %v673_v4, %v1671_v14  ;;  %v702_v40 = vadd.f32 %v1686_v17, %v700_v16 }
 0x102   : > { %v739_v42 = vadd.f32 %v737_v52, %v735_v43  ;;  %v667_v52 = vadd.f32 %v1705_v21, %v1821_v54  ;;  %v664_v54 = vmul.f32 -0.125, %v663_v36  ;;  %v676_v11 = vmul.f32 0.5, %v675_v13  ;;  %v814_v36 = vpop.permute.xlu2 %813 }
 0x103   : > { %853 = vrot.lane.b32.xlu0 %v1788_v34, %s1562_s25  ;;  %v718_v43 = vadd.f32 %v1784_v32, %v1671_v14 }
 0x104   : > { %442 = vrot.lane.b32.xlu2 %v440_v45, %s1563_s26  ;;  %v741_v20 = vadd.f32 %v1329_v55, %v739_v42  ;;  %v472_v55 = vadd.f32 %v1705_v21, %v1829_v62  ;;  %v668_v2 = vmul.f32 0.0625, %v667_v52  ;;  %v703_v21 = vmul.f32 -0.125, %v702_v40 }
 0x105   : > { %v719_v28 = vmul.f32 0.5, %v718_v43 }
 0x106   : > { %v830_v49 = vpop.permute.xlu0 %829  ;;  %v742_v57 = vmul.f32 -0.1875, %v741_v20  ;;  %v473_v63 = vmul.f32 -0.125, %v472_v55  ;;  %v669_v9 = vadd.f32 %v668_v2, %v664_v54  ;;  %v424_v20 = vadd.f32 %v1784_v32, %v1818_v53  ;;  %v1977_v53 = vld [vmem:[#allocation2 + $0x10] sm:$0xff] }
 0x107   : > { %v753_v47 = vpop.permute.xlu1 %752  ;;  %v832_v50 = vadd.f32 %v830_v49, %v1788_v34  ;;  %v446_v49 = vmul.f32 0.75, %v1671_v14 }
 0x108   : > { %v755_v48 = vadd.f32 %v753_v47, %v750_v46  ;;  %v677_v19 = vadd.f32 %v676_v11, %v669_v9  ;;  %v425_v47 = vmul.f32 -0.1875, %v424_v20 }
 0x109   : > { %v833_v59 = vmul.f32 0.0625, %v832_v50 }
 0x10a   : > { %v756_v51 = vmul.f32 0.25, %v755_v48  ;;  %v679_v23 = vadd.f32 %v677_v19, %v491_v8 }
 0x10b   : > { %994 = vrot.lane.b32.xlu0 %v1788_v34, %s1563_s26  ;;  %835 = vrot.lane.b32.xlu1 %v833_v59, %s1563_s26 }
 0x10c   : > { %v757_v61 = vadd.f32 %v756_v51, %v742_v57  ;;  %v811_v51 = vadd.f32 %v1839_v37, %v1977_v53 }
 0x10e   : > { %v759_v1 = vadd.f32 %v758_v56, %v757_v61  ;;  %v483_v62 = vpop.permute.xlu0 %482  ;;  %v816_v59 = vadd.f32 %v814_v36, %v811_v51 }
 0x10f   : > { %v774_v3 = vpop.permute.xlu1 %773  ;;  %v485_v15 = vadd.f32 %v483_v62, %v473_v63  ;;  %v841_v63 = vadd.f32 %v1786_v33, %v1773_v29 }
 0x110   : > { %v1891_v6 = vadd.f32 %v774_v3, %v772_v0  ;;  %761 = vrot.lane.b32.xlu2 %v759_v1, %s1562_s25  ;;  %v818_v14 = vadd.f32 %v1805_v41, %v816_v59 }
 0x111   : > { %v490_v10 = vadd.f32 %v489_v5, %v485_v15 }
 0x112   : > { %v778_v48 = vadd.f32 %v1933_v27, %v1891_v6  ;;  %v842_v6 = vmul.f32 0.5, %v841_v63 }
 0x113   : > { %905 = vrot.lane.b32.xlu0 %v1775_v30, %s1563_s26  ;;  %988 = vrot.lane.b32.xlu1 %v1839_v37, %s1562_s25  ;;  %v1900_v18 = vadd.f32 %v491_v8, %v490_v10  ;;  %v1997_v8 = vmul.f32 0.625, %v1788_v34 }
 0x114   : > { %v779_v50 = vmul.f32 -0.1875, %v778_v48  ;;  %v928_v48 = vmul.f32 0.5, %v1775_v30 }
 0x117   : > { %v1051_v4 = vpop.permute.xlu1 %1050 }
 0x118   : > { %1033 = vrot.lane.b32.xlu2 %v1788_v34, %s1563_s26  ;;  %v1053_v24 = vadd.f32 %v1051_v4, %v1805_v41 }
 0x11a   : > { %v1054_v25 = vmul.f32 0.0625, %v1053_v24 }
 0x11b   : > { %1075 = vrot.lane.b32.xlu0 %v1786_v33, %s1563_s26  ;;  %681 = vrot.lane.b32.xlu1 %v679_v23, %s1562_s25 }
 0x120   : > { %1040 = vrot.lane.b32.xlu2 %v1907_v12, %s1563_s26 }
 0x123   : > { %954 = vrot.lane.b32.xlu0 %v1786_v33, %s1562_s25  ;;  %998 = vrot.lane.b32.xlu1 %v1788_v34, %s1562_s25 }
 0x128   : > { %950 = vrot.lane.b32.xlu2 %v1786_v33, %s1563_s26 }
 0x12b   : > { %1079 = vrot.lane.b32.xlu0 %v1786_v33, %s1562_s25  ;;  %919 = vrot.lane.b32.xlu1 %v1788_v34, %s1563_s26 }
 0x130   : > { %909 = vrot.lane.b32.xlu2 %v1775_v30, %s1562_s25 }
 0x133   : > { %1056 = vrot.lane.b32.xlu0 %v1054_v25, %s1563_s26  ;;  %1088 = vrot.lane.b32.xlu1 %v1775_v30, %s1562_s25 }
 0x138   : > { %1005 = vrot.lane.b32.xlu2 %v1805_v41, %s1562_s25 }
 0x13b   : > { %883 = vrot.lane.b32.xlu0 %v1786_v33, %s1562_s25  ;;  %965 = vrot.lane.b32.xlu1 %v1805_v41, %s1562_s25 }
 0x140   : > { %1095 = vrot.lane.b32.xlu2 %v1933_v27, %s1562_s25 }
 0x143   : > { %898 = vrot.lane.b32.xlu0 %v1805_v41, %s1562_s25  ;;  %1017 = vrot.lane.b32.xlu1 %v1775_v30, %s1562_s25 }
 0x148   : > { %867 = vrot.lane.b32.xlu2 %v1907_v12, %s1562_s25 }
 0x14b   : > { %943 = vrot.lane.b32.xlu0 %v1786_v33, %s1562_s25  ;;  %860 = vrot.lane.b32.xlu1 %v1805_v41, %s1561_s24  ;;  %s1481_s24 = scalar_lea.hbm %s2125_s2, 384 }
 0x14c   : > { %p1483_p6 = scmp.lt.s32.totalorder %s1481_s24, %s1477_s19 }
 0x14d   : > { %v582_v38 = vpop.permute.xlu0 %581 }
 0x14e   : > { %1323 = vst.msk [vmem:[%s1810_s30 + $0x40] sm:$0xff] %vm452_vm1, %v582_v38  ;;  %p1484_p7 = por %p1483_p6, %p1482_p4 }
 0x150   : > { %891 = vrot.lane.b32.xlu2 %v1946_v35, %s1562_s25  ;;  %p1485_p8 = pnand %p1484_p7, %p1480_p3 }
 0x153   : > { %877 = vrot.lane.b32.xlu1 %v875_v39, %s1562_s25 }
 0x156   : > { %v713_v44 = vpop.permute.xlu2 %712 }
 0x157   : > { %v715_v45 = vadd.f32 %v713_v44, %v703_v21 }
 0x158   : > { %937 = vrot.lane.b32.xlu2 %v1775_v30, %s1562_s25 }
 0x159   : > { %v720_v26 = vadd.f32 %v719_v28, %v715_v45 }
 0x15b   : > { %v722_v42 = vadd.f32 %v720_v26, %v1714_v22 }
 0x15c   : > { %v630_v46 = vpop.permute.xlu0 %629 }
 0x15d   : > { %1333 = vst.msk [vmem:[%s1810_s30 + $0x70] sm:$0xff] %vm452_vm1, %v630_v46  ;;  %724 = vrot.lane.b32.xlu0 %v722_v42, %s1562_s25 }
 0x15e   : > { %v443_v17 = vpop.permute.xlu2 %442 }
 0x15f   : > { %v445_v22 = vadd.f32 %v443_v17, %v425_v47 }
 0x160   : > { %982 = vrot.lane.b32.xlu2 %v1788_v34, %s1562_s25 }
 0x161   : > { %v447_v56 = vadd.f32 %v446_v49, %v445_v22 }
 0x165   : > { %v797_v32 = vpop.permute.xlu0 %796 }
 0x166   : > { %v1979_v57 = vadd.f32 %v797_v32, %v779_v50 }
 0x168   : > { %449 = vrot.lane.b32.xlu2 %v447_v56, %s1562_s25  ;;  %v958_v56 = vld [vmem:[#allocation2 + $0x32] sm:$0xff] }
 0x16a   : > { %v762_v52 = vpop.permute.xlu2 %761 }
 0x16b   : > { %1351 = vst.msk [vmem:[%s1810_s30 + $0xb0] sm:$0xff] %vm452_vm1, %v762_v52 }
 0x16d   : > { %v821_v55 = vpop.permute.xlu0 %820 }
 0x16e   : > { %v823_v0 = vadd.f32 %v821_v55, %v818_v14 }
 0x170   : > { %v825_v54 = vadd.f32 %v1907_v12, %v823_v0 }
 0x172   : > { %v1034_v60 = vpop.permute.xlu2 %1033  ;;  %v826_v62 = vmul.f32 -0.125, %v825_v54 }
 0x173   : > { %v1036_v61 = vadd.f32 %v1034_v60, %v1839_v37 }
 0x175   : > { %v1988_v1 = vpop.permute.xlu0 %853  ;;  %v1037_v2 = vadd.f32 %v1036_v61, %v1788_v34 }
 0x17a   : > { %v1041_v3 = vpop.permute.xlu2 %1040 }
 0x17b   : > { %v1994_v5 = vadd.f32 %v1041_v3, %v1037_v2  ;;  %v1101_v3 = vmul.f32 0.75, %v1786_v33 }
 0x17d   : > { %v995_v13 = vpop.permute.xlu0 %994  ;;  %v836_v15 = vpop.permute.xlu1 %835 }
 0x17e   : > { %v838_v9 = vadd.f32 %v836_v15, %v826_v62 }
 0x180   : > { %v843_v10 = vadd.f32 %v842_v6, %v838_v9 }
 0x182   : > { %v951_v11 = vpop.permute.xlu2 %950  ;;  %v845_v19 = vadd.f32 %v1997_v8, %v843_v10 }
 0x183   : > { %v953_v50 = vadd.f32 %v951_v11, %v1773_v29 }
 0x184   : > { %847 = vrot.lane.b32.xlu2 %v845_v19, %s1562_s25 }
 0x185   : > { %v906_v23 = vpop.permute.xlu0 %905  ;;  %v989_v4 = vpop.permute.xlu1 %988 }
 0x186   : > { %v908_v39 = vadd.f32 %v906_v23, %v1881_v58  ;;  %v991_v46 = vadd.f32 %v989_v4, %v1839_v37 }
 0x188   : > { %v997_v51 = vadd.f32 %v995_v13, %v991_v46  ;;  %v1044_v46 = vadd.f32 %v1994_v5, %v1907_v12 }
 0x18a   : > { %v910_v24 = vpop.permute.xlu2 %909 }
 0x18b   : > { %v912_v43 = vadd.f32 %v910_v24, %v908_v39  ;;  %v1012_v24 = vadd.f32 %v1907_v12, %v1977_v53 }
 0x18d   : > { %v1076_v25 = vpop.permute.xlu0 %1075  ;;  %v682_v36 = vpop.permute.xlu1 %681  ;;  %v914_v44 = vadd.f32 %v912_v43, %v1933_v27 }
 0x18e   : > { %1341 = vst.msk [vmem:[%s1810_s30 + $0x90] sm:$0xff] %vm452_vm1, %v682_v36  ;;  %v1078_v45 = vadd.f32 %v1076_v25, %v1773_v29  ;;  %v963_v29 = vadd.f32 %v1805_v41, %v1788_v34  ;;  %v973_v25 = vmul.f32 0.5, %v1786_v33 }
 0x18f   : > { %v915_v17 = vmul.f32 -0.125, %v914_v44 }
 0x192   : > { %v1006_v16 = vpop.permute.xlu2 %1005 }
 0x195   : > { %v955_v7 = vpop.permute.xlu0 %954  ;;  %v999_v38 = vpop.permute.xlu1 %998 }
 0x196   : > { %v1001_v14 = vadd.f32 %v999_v38, %v997_v51  ;;  %v957_v0 = vadd.f32 %v955_v7, %v953_v50 }
 0x198   : > { %v1003_v63 = vadd.f32 %v1805_v41, %v1001_v14  ;;  %v959_v15 = vadd.f32 %v958_v56, %v957_v0 }
 0x19a   : > { %v1096_v40 = vpop.permute.xlu2 %1095  ;;  %v1008_v11 = vadd.f32 %v1006_v16, %v1003_v63  ;;  %v960_v36 = vmul.f32 -0.125, %v959_v15 }
 0x19c   : > { %v1009_v38 = vmul.f32 -0.125, %v1008_v11 }
 0x19d   : > { %v1080_v21 = vpop.permute.xlu0 %1079  ;;  %v920_v28 = vpop.permute.xlu1 %919 }
 0x19e   : > { %v922_v26 = vadd.f32 %v920_v28, %v1839_v37  ;;  %v1082_v58 = vadd.f32 %v1080_v21, %v1078_v45  ;;  %v856_v28 = vadd.f32 %v1988_v1, %v1788_v34  ;;  %v1046_v1 = vadd.f32 %v1044_v46, %v1943_v31 }
 0x1a0   : > { %v923_v42 = vadd.f32 %v922_v26, %v1788_v34  ;;  %v1084_v52 = vadd.f32 %v1082_v58, %v958_v56  ;;  %v1047_v31 = vmul.f32 -0.125, %v1046_v1 }
 0x1a2   : > { %v2008_v20 = vpop.permute.xlu2 %867  ;;  %v925_v47 = vadd.f32 %v1805_v41, %v923_v42  ;;  %v1085_v2 = vmul.f32 -0.1875, %v1084_v52 }
 0x1a4   : > { %v926_v49 = vmul.f32 0.25, %v925_v47 }
 0x1a5   : > { %v2013_v22 = vpop.permute.xlu0 %1056  ;;  %v1089_v32 = vpop.permute.xlu1 %1088 }
 0x1a6   : > { %v1091_v59 = vadd.f32 %v1089_v32, %v1775_v30  ;;  %v927_v55 = vadd.f32 %v926_v49, %v915_v17  ;;  %v858_v17 = vadd.f32 %v1805_v41, %v856_v28  ;;  %v800_v41 = vmul.f32 0.75, %v1775_v30 }
 0x1a7   : > { %v1059_v52 = vadd.f32 %v2013_v22, %v1047_v31 }
 0x1a8   : > { %v1093_v37 = vadd.f32 %v1091_v59, %v1933_v27  ;;  %v929_v61 = vadd.f32 %v928_v48, %v927_v55  ;;  %v801_v51 = vadd.f32 %v800_v41, %v1979_v57 }
 0x1aa   : > { %v2018_v60 = vpop.permute.xlu2 %891  ;;  %v1098_v54 = vadd.f32 %v1096_v40, %v1093_v37  ;;  %931 = vrot.lane.b32.xlu1 %v929_v61, %s1562_s25  ;;  %v1013_v40 = vmul.f32 0.0625, %v1012_v24 }
 0x1ac   : > { %v1099_v6 = vmul.f32 0.25, %v1098_v54  ;;  %v1014_v44 = vadd.f32 %v1013_v40, %v1009_v38 }
 0x1ad   : > { %v884_v62 = vpop.permute.xlu0 %883  ;;  %v966_v13 = vpop.permute.xlu1 %965 }
 0x1ae   : > { %v968_v9 = vadd.f32 %v966_v13, %v963_v29  ;;  %v1100_v10 = vadd.f32 %v1099_v6, %v1085_v2  ;;  %v886_v49 = vadd.f32 %v884_v62, %v1786_v33 }
 0x1b0   : > { %v970_v19 = vadd.f32 %v1907_v12, %v968_v9  ;;  %v1102_v4 = vadd.f32 %v1101_v3, %v1100_v10  ;;  %v887_v32 = vmul.f32 0.5, %v886_v49 }
 0x1b2   : > { %v938_v23 = vpop.permute.xlu2 %937  ;;  %v971_v7 = vmul.f32 0.25, %v970_v19  ;;  %1104 = vrot.lane.b32.xlu2 %v1102_v4, %s1562_s25 }
 0x1b3   : > { %1356 = vst.msk [vmem:[%s1810_s30 + $0x58] sm:$0xff] %vm452_vm1, %v938_v23 }
 0x1b4   : > { %v972_v39 = vadd.f32 %v971_v7, %v960_v36 }
 0x1b5   : > { %v899_v16 = vpop.permute.xlu0 %898  ;;  %v1018_v43 = vpop.permute.xlu1 %1017 }
 0x1b6   : > { %1354 = vst.msk [vmem:[%s1810_s30 + $0x38] sm:$0xff] %vm452_vm1, %v899_v16  ;;  %v1020_v21 = vadd.f32 %v1018_v43, %v1775_v30  ;;  %v974_v53 = vadd.f32 %v973_v25, %v972_v39 }
 0x1b8   : > { %v1021_v45 = vmul.f32 0.5, %v1020_v21  ;;  %976 = vrot.lane.b32.xlu1 %v974_v53, %s1562_s25 }
 0x1ba   : > { %v983_v26 = vpop.permute.xlu2 %982  ;;  %v1022_v42 = vadd.f32 %v1021_v45, %v1014_v44 }
 0x1bb   : > { %1359 = vst.msk [vmem:[%s1810_s30 + $0x88] sm:$0xff] %vm452_vm1, %v983_v26 }
 0x1bc   : > { %v1024_v47 = vadd.f32 %v1022_v42, %v1997_v8  ;;  %v1062_v8 = vadd.f32 %v1933_v27, %v1775_v30 }
 0x1bd   : > { %v944_v58 = vpop.permute.xlu0 %943  ;;  %v861_v48 = vpop.permute.xlu1 %860 }
 0x1be   : > { %1357 = vst.msk [vmem:[%s1810_s30 + $0x68] sm:$0xff] %vm452_vm1, %v944_v58  ;;  %v863_v34 = vadd.f32 %v861_v48, %v858_v17  ;;  %1026 = vrot.lane.b32.xlu0 %v1024_v47, %s1562_s25 }
 0x1c0   : > { %v865_v50 = vadd.f32 %v1907_v12, %v863_v34  ;;  %494 = vrot.lane.b32.xlu1 %v1900_v18, %s1562_s25  ;;  %v1063_v18 = vmul.f32 0.5, %v1062_v8 }
 0x1c2   : > { %v450_v5 = vpop.permute.xlu2 %449  ;;  %v870_v56 = vadd.f32 %v2008_v20, %v865_v50  ;;  %v1064_v30 = vadd.f32 %v1063_v18, %v1059_v52 }
 0x1c3   : > { %453 = vst.msk [vmem:[%s1810_s30] sm:$0xff] %vm452_vm1, %v450_v5 }
 0x1c4   : > { %v871_v33 = vmul.f32 -0.125, %v870_v56  ;;  %v1066_v57 = vadd.f32 %v1946_v35, %v1064_v30 }
 0x1c5   : > { %v878_v12 = vpop.permute.xlu1 %877 }
 0x1c6   : > { %v880_v59 = vadd.f32 %v878_v12, %v871_v33 }
 0x1c8   : > { %v888_v55 = vadd.f32 %v887_v32, %v880_v59  ;;  %803 = vrot.lane.b32.xlu1 %v801_v51, %s1562_s25 }
 0x1ca   : > { %v894_v27 = vadd.f32 %v2018_v60, %v888_v55 }
 0x1cc   : > { %1353 = vst.msk [vmem:[%s1810_s30 + $0x28] sm:$0xff] %vm452_vm1, %v894_v27 }
 0x1cf   : > { %v725_v20 = vpop.permute.xlu0 %724 }
 0x1d0   : > { %1347 = vst.msk [vmem:[%s1810_s30 + $0xa0] sm:$0xff] %vm452_vm1, %v725_v20  ;;  %1068 = vrot.lane.b32.xlu1 %v1066_v57, %s1562_s25 }
 0x1de   : > { %v848_v22 = vpop.permute.xlu2 %847 }
 0x1df   : > { %1352 = vst.msk [vmem:[%s1810_s30 + $0x18] sm:$0xff] %vm452_vm1, %v848_v22 }
 0x20c   : > { %v1105_v14 = vpop.permute.xlu2 %1104 }
 0x20d   : > { %1362 = vst.msk [vmem:[%s1810_s30 + $0xb8] sm:$0xff] %vm452_vm1, %v1105_v14 }
 0x21c   : > { %v932_v37 = vpop.permute.xlu1 %931 }
 0x21d   : > { %1355 = vst.msk [vmem:[%s1810_s30 + $0x48] sm:$0xff] %vm452_vm1, %v932_v37 }
 0x22a   : > { %v977_v60 = vpop.permute.xlu1 %976 }
 0x22b   : > { %1358 = vst.msk [vmem:[%s1810_s30 + $0x78] sm:$0xff] %vm452_vm1, %v977_v60 }
 0x230   : > { %v1027_v61 = vpop.permute.xlu0 %1026 }
 0x231   : > { %1360 = vst.msk [vmem:[%s1810_s30 + $0x98] sm:$0xff] %vm452_vm1, %v1027_v61 }
 0x232   : > { %v495_v35 = vpop.permute.xlu1 %494 }
 0x233   : > { %1310 = vst.msk [vmem:[%s1810_s30 + $0x10] sm:$0xff] %vm452_vm1, %v495_v35 }
 0x23a   : > { %v804_v0 = vpop.permute.xlu1 %803 }
 0x23b   : > { %806 = vst.msk [vmem:[%s1810_s30 + $0x8] sm:$0xff] %vm452_vm1, %v804_v0 }
 0x242   : > { %v1069_v2 = vpop.permute.xlu1 %1068 }
 0x243   : > { %1361 = vst.msk [vmem:[%s1810_s30 + $0xa8] sm:$0xff] %vm452_vm1, %v1069_v2 }
 0x244   : > { %1488 = shalt.err (!%p1485_p8)
}
 0x245   : > { %s1564_s18 = smov 128   ;;  %s1565_s27 = smov 8  }
 0x246   : > { %1369 = dma.vmem_to_hbm [thread:$0]  (%p1624_p5), %s1124_s7, 3072, %s1126_s8, %s1109_s15, %s1564_s18, %s1564_s18, %s1565_s27  }
 0x247 PF: > { %s1140_s28 = sand.u32 1, %s1535_s9   ;;  %p1372_p11 = pnand %p1281_p10, %p1635_p9 }
 0x248   : > { %s1141_s29 = scalar_lea.sflag [#allocation6], %s1140_s28 }
 0x249   : > { %p1373_p12 = pneg %p1372_p11 }
 0x24b   : > { %1530 = dma.done.wait (%p1373_p12), %s1141_s29, 3072  }
 0x24c   : > { %1532 = vsyncadd (%p1373_p12), %s1141_s29, 4294964224  ;;  %s15_s14 = sadd.s32 1, %s1555_s14   ;;  %s2129_s9 = smov %s1539_s10 }
 0x24d   : > { %p12_p13 = scmp.ge.s32.totalorder %s15_s14, 4   ;;  %s2130_s10 = smov %s1543_s11 }
 0x24e   : > { %s2131_s11 = smov %s1633_s22  ;;  %s2132_s12 = smov %s1551_s13 }
 0x24f   : > { %s2133_s13 = smov %s2135_s17  ;;  %14 = sbr.rel (!%p12_p13) target bundleno = 4 (0x4), region = 213 }
 0x254   :  { %1147 = vsyncpa [#allocation6], 1 }
 0x255   :  { %1149 = vsyncpa [#allocation6 + $0x1], 1 }

</bundles_post_ra>
